<compile_context>
chip_gen: v7x
topology: tpu7x:2x2x1
jax: 0.10.0
libtpu: 0.0.40
codegen_flags: <defaults>
</compile_context>

<pallas_src>
import jax
import jax.numpy as jnp
from jax.experimental import pallas as pl
from jax.experimental.pallas import tpu as pltpu

BN_EPS = 1e-5
LANE = 128


def _largest_divisor_leq(n, cap):
    for d in range(min(n, cap), 0, -1):
        if n % d == 0:
            return d
    return 1


# ---------------------------------------------------------------------------
# Pallas kernels
# ---------------------------------------------------------------------------
def maxpool_kernel(x_ref, o_ref):
    # x_ref: (1, TP, 2, Wo, 2*C)  -- TP pooled rows; 2x2 window laid out as
    #        (row-pair dim, lane-pair in the last dim).
    # o_ref: (1, TP, Wo, C)
    c = o_ref.shape[-1]
    x = x_ref[0]                                   # (TP, 2, Wo, 2C)
    v = jnp.maximum(x[:, 0], x[:, 1])              # max over the H pair
    m = jnp.maximum(v[..., :c], v[..., c:])        # max over the W pair (lane halves)
    o_ref[0] = m.astype(o_ref.dtype)


def conv_stats_kernel(x0_ref, x1_ref, x2_ref, w_ref, b_ref, y_ref, stats_ref):
    # One output row per grid step, conv as 9 shifted MXU matmuls.
    #   x{dy}_ref : (1, 1, W+2, Cin)   bf16  zero-padded input row (h + dy)
    #   w_ref     : (3, 3, Cin, Cpad)  bf16  (dy, dx, cin, cout), VMEM-resident
    #   b_ref     : (1, Cpad)          f32   conv bias, VMEM-resident
    #   y_ref     : (1, 1, W, Cpad)    f32   conv + bias (pre-BN), lane-dense
    #   stats_ref : (1, 1, 2, Cpad)    f32   per-row [sum, sum-of-squares]
    w_out = y_ref.shape[2]
    cpad = y_ref.shape[3]
    acc = jnp.zeros((w_out, cpad), jnp.float32)
    rows = (x0_ref[0, 0], x1_ref[0, 0], x2_ref[0, 0])      # each (W+2, Cin) bf16
    for dy in range(3):
        row = rows[dy]
        for dx in range(3):
            acc = acc + jnp.dot(row[dx:dx + w_out, :], w_ref[dy, dx],
                                preferred_element_type=jnp.float32)
    acc = acc + b_ref[...]                                  # (1, Cpad) broadcast
    y_ref[0, 0] = acc
    stats_ref[0, 0, 0:1, :] = jnp.sum(acc, axis=0, keepdims=True)
    stats_ref[0, 0, 1:2, :] = jnp.sum(acc * acc, axis=0, keepdims=True)


def bn_relu_kernel(y_ref, scale_ref, shift_ref, o_ref):
    # y_ref: (1, 1, W, Cpad) f32 ; scale/shift: (1, Cpad) f32 (VMEM-resident)
    z = y_ref[0, 0] * scale_ref[...] + shift_ref[...]
    o_ref[0, 0] = jnp.maximum(z, 0.0).astype(o_ref.dtype)


# ---------------------------------------------------------------------------
# Wrappers
# ---------------------------------------------------------------------------
def maxpool2x2(x_nhwc):
    n, h, w, c = x_nhwc.shape
    assert h % 2 == 0 and w % 2 == 0, "MaxPool2d(2) expects even spatial dims"
    ho, wo = h // 2, w // 2
    x5 = x_nhwc.reshape(n, ho, 2, wo, 2 * c)               # free, contiguous reshape
    tp = _largest_divisor_leq(ho, 8)                       # pooled rows per grid step
    return pl.pallas_call(
        maxpool_kernel,
        out_shape=jax.ShapeDtypeStruct((n, ho, wo, c), jnp.bfloat16),
        grid=(n, ho // tp),
        in_specs=[pl.BlockSpec((1, tp, 2, wo, 2 * c),
                               lambda i, t: (i, t, 0, 0, 0))],
        out_specs=pl.BlockSpec((1, tp, wo, c), lambda i, t: (i, t, 0, 0)),
        compiler_params=pltpu.CompilerParams(
            dimension_semantics=("parallel", "parallel")),
    )(x5)


def conv3x3_bias_stats(x_nhwc, w_packed, bias_row):
    # x_nhwc: (N, H, W, Cin) activation ; w_packed: (3, 3, Cin, Cpad) bf16 ; bias_row: (1, Cpad) f32
    n, h, w, cin = x_nhwc.shape
    cpad = w_packed.shape[-1]
    xp = jnp.pad(x_nhwc.astype(jnp.bfloat16), ((0, 0), (1, 1), (1, 1), (0, 0)))
    wp = w + 2

    def shifted_spec(dy):
        # dy-shifted view of the same padded buffer (block size 1 along H ->
        # block index == element row, so the +dy halo shift is expressible).
        return pl.BlockSpec((1, 1, wp, cin), lambda i, r, dy=dy: (i, r + dy, 0, 0))

    flops = 2 * n * h * w * 9 * cin * cpad
    bytes_accessed = (3 * xp.size * xp.dtype.itemsize + w_packed.size * 2
                      + n * h * w * cpad * 4 + n * h * 2 * cpad * 4)

    y, stats = pl.pallas_call(
        conv_stats_kernel,
        out_shape=(jax.ShapeDtypeStruct((n, h, w, cpad), jnp.float32),
                   jax.ShapeDtypeStruct((n, h, 2, cpad), jnp.float32)),
        grid=(n, h),
        in_specs=[shifted_spec(0), shifted_spec(1), shifted_spec(2),
                  pl.BlockSpec((3, 3, cin, cpad), lambda i, r: (0, 0, 0, 0)),
                  pl.BlockSpec((1, cpad), lambda i, r: (0, 0))],
        out_specs=(pl.BlockSpec((1, 1, w, cpad), lambda i, r: (i, r, 0, 0)),
                   pl.BlockSpec((1, 1, 2, cpad), lambda i, r: (i, r, 0, 0))),
        compiler_params=pltpu.CompilerParams(
            dimension_semantics=("parallel", "parallel"),
            vmem_limit_bytes=32 * 1024 * 1024),
        cost_estimate=pl.CostEstimate(flops=flops, transcendentals=0,
                                      bytes_accessed=bytes_accessed),
    )(xp, xp, xp, w_packed, bias_row)
    return y, stats


def bn_relu(y, scale_row, shift_row, out_dtype):
    n, h, w, cpad = y.shape
    return pl.pallas_call(
        bn_relu_kernel,
        out_shape=jax.ShapeDtypeStruct((n, h, w, cpad), out_dtype),
        grid=(n, h),
        in_specs=[pl.BlockSpec((1, 1, w, cpad), lambda i, r: (i, r, 0, 0)),
                  pl.BlockSpec((1, cpad), lambda i, r: (0, 0)),
                  pl.BlockSpec((1, cpad), lambda i, r: (0, 0))],
        out_specs=pl.BlockSpec((1, 1, w, cpad), lambda i, r: (i, r, 0, 0)),
        compiler_params=pltpu.CompilerParams(
            dimension_semantics=("parallel", "parallel")),
    )(y, scale_row, shift_row)


# ---------------------------------------------------------------------------
# Parameter packing + BN stats glue (plain JAX)
# ---------------------------------------------------------------------------
def _pack_weight(w_oihw, cin_pad, cout_pad):
    cout, cin = w_oihw.shape[0], w_oihw.shape[1]
    w = jnp.transpose(w_oihw, (2, 3, 1, 0))                # (kh, kw, Cin, Cout)
    w = jnp.pad(w, ((0, 0), (0, 0), (0, cin_pad - cin), (0, cout_pad - cout)))
    return w.astype(jnp.bfloat16)


def _pad_vec(v, cpad):
    return jnp.pad(v.astype(jnp.float32), (0, cpad - v.shape[0]))


def _bn_scale_shift(stats, gamma_pad, beta_pad, count):
    # stats: (N, H, 2, Cpad) per-row [sum, sumsq]; combine -> per-channel affine.
    s = jnp.sum(stats[:, :, 0, :], axis=(0, 1))
    sq = jnp.sum(stats[:, :, 1, :], axis=(0, 1))
    mean = s / count
    var = jnp.maximum(sq / count - mean * mean, 0.0)       # biased variance (PyTorch BN train)
    inv = jax.lax.rsqrt(var + BN_EPS)
    scale = gamma_pad * inv
    shift = beta_pad - mean * scale
    cpad = scale.shape[0]
    return (scale.reshape(1, cpad).astype(jnp.float32),
            shift.reshape(1, cpad).astype(jnp.float32))


# ---------------------------------------------------------------------------
# Full layer: maxpool -> (conv -> BN -> ReLU) x 2
# ---------------------------------------------------------------------------
def vanilla_unet_down_layer(x_nchw, params):
    x = jnp.transpose(x_nchw, (0, 2, 3, 1)).astype(jnp.float32)   # NHWC
    n, h, w, cin = x.shape
    cout = params["w1"].shape[0]
    cpad = ((cout + LANE - 1) // LANE) * LANE              # lane-dense channel padding

    # MaxPool2d(2): bf16 output feeds the bf16 MXU path of conv1 directly.
    p = maxpool2x2(x)                                      # (N, Ho, Wo, Cin) bf16
    ho, wo = h // 2, w // 2
    count = float(n * ho * wo)                             # BN reduces over N*H*W

    # conv1 -> BN1 -> ReLU1
    w1 = _pack_weight(params["w1"], cin, cpad)
    b1 = _pad_vec(params["b1"], cpad).reshape(1, cpad)
    y1, st1 = conv3x3_bias_stats(p, w1, b1)
    sc1, sh1 = _bn_scale_shift(st1, _pad_vec(params["g1"], cpad),
                               _pad_vec(params["be1"], cpad), count)
    a1 = bn_relu(y1, sc1, sh1, jnp.bfloat16)               # padded channels stay exactly 0

    # conv2 -> BN2 -> ReLU2
    w2 = _pack_weight(params["w2"], cpad, cpad)
    b2 = _pad_vec(params["b2"], cpad).reshape(1, cpad)
    y2, st2 = conv3x3_bias_stats(a1, w2, b2)
    sc2, sh2 = _bn_scale_shift(st2, _pad_vec(params["g2"], cpad),
                               _pad_vec(params["be2"], cpad), count)
    out = bn_relu(y2, sc2, sh2, jnp.float32)

    out = out[..., :cout]                                  # drop lane padding
    return jnp.transpose(out, (0, 3, 1, 2))                # back to NCHW
    # TODO(synk): PyTorch BatchNorm2d also updates running_mean/running_var buffers in
    # training mode; that in-place side effect is not materialized here (forward output only).


# ---------------------------------------------------------------------------
# Pure-JAX reference (PyTorch-faithful forward, f32 HIGHEST precision)
# ---------------------------------------------------------------------------
def reference(x_nchw, params):
    n, c, h, w = x_nchw.shape
    x = x_nchw.reshape(n, c, h // 2, 2, w // 2, 2).max(axis=(3, 5))

    def unit(x, wgt, b, g, be):
        y = jax.lax.conv_general_dilated(
            x, wgt, (1, 1), "SAME",
            dimension_numbers=("NCHW", "OIHW", "NCHW"),
            precision=jax.lax.Precision.HIGHEST,
        ) + b[None, :, None, None]
        mean = y.mean(axis=(0, 2, 3), keepdims=True)
        var = ((y - mean) ** 2).mean(axis=(0, 2, 3), keepdims=True)
        y = (y - mean) / jnp.sqrt(var + BN_EPS)
        y = y * g[None, :, None, None] + be[None, :, None, None]
        return jnp.maximum(y, 0.0)

    x = unit(x, params["w1"], params["b1"], params["g1"], params["be1"])
    x = unit(x, params["w2"], params["b2"], params["g2"], params["be2"])
    return x


# ---------------------------------------------------------------------------
# Main
# ---------------------------------------------------------------------------
if __name__ == "__main__":
    in_channels, out_channels = 4, 8
    N, H, W = 2, 16, 16

    key = jax.random.PRNGKey(0)
    k_x, k_w1, k_b1, k_w2, k_b2 = jax.random.split(key, 5)

    x = jax.random.normal(k_x, (N, in_channels, H, W), dtype=jnp.float32)

    params = {
        "w1": 0.2 * jax.random.normal(k_w1, (out_channels, in_channels, 3, 3), jnp.float32),
        "b1": 0.1 * jax.random.normal(k_b1, (out_channels,), jnp.float32),
        "g1": jnp.ones((out_channels,), jnp.float32),      # BatchNorm2d default gamma
        "be1": jnp.zeros((out_channels,), jnp.float32),    # BatchNorm2d default beta
        "w2": 0.2 * jax.random.normal(k_w2, (out_channels, out_channels, 3, 3), jnp.float32),
        "b2": 0.1 * jax.random.normal(k_b2, (out_channels,), jnp.float32),
        "g2": jnp.ones((out_channels,), jnp.float32),
        "be2": jnp.zeros((out_channels,), jnp.float32),
    }

    out = jax.jit(vanilla_unet_down_layer)(x, params)
    out = jax.block_until_ready(out)

    ref = reference(x, params)
    assert out.shape == (N, out_channels, H // 2, W // 2), out.shape
    max_err = float(jnp.max(jnp.abs(out - ref)))
    # 3e-2 tolerance absorbs the bf16 MXU-input path (f32 accumulation).
    assert jnp.allclose(out, ref, atol=3e-2, rtol=3e-2), max_err

    print("KERNEL_OK")
</pallas_src>

<mosaic_0001>
module attributes {stable_mosaic.version = 11 : i64} {
  func.func @maxpool_kernel(%arg0: i32, %arg1: i32, %arg2: memref<1x8x2x8x8xf32, #tpu.memory_space<vmem>>, %arg3: memref<1x8x8x4xbf16, #tpu.memory_space<vmem>>) attributes {dimension_semantics = [#tpu.dimension_semantics<parallel>, #tpu.dimension_semantics<parallel>], iteration_bounds = array<i64: 2, 1>, scalar_prefetch = 0 : i64, scratch_operands = 0 : i64, tpu.core_type = #tpu.core_type<tc>, window_params = [{transform_indices = @transform_0, window_bounds = array<i64: 1, 8, 2, 8, 8>}, {transform_indices = @transform_1, window_bounds = array<i64: 1, 8, 8, 4>}]} {
    %c0 = arith.constant 0 : index
    %c0_0 = arith.constant 0 : index
    %c0_1 = arith.constant 0 : index
    %c0_2 = arith.constant 0 : index
    %c0_3 = arith.constant 0 : index
    %0 = vector.load %arg2[%c0, %c0_0, %c0_1, %c0_2, %c0_3] : memref<1x8x2x8x8xf32, #tpu.memory_space<vmem>>, vector<1x8x2x8x8xf32>
    %1 = vector.shape_cast %0 : vector<1x8x2x8x8xf32> to vector<8x2x8x8xf32>
    %2 = vector.extract_strided_slice %1 {offsets = [0, 0, 0, 0], sizes = [8, 1, 8, 8], strides = [1, 1, 1, 1]} : vector<8x2x8x8xf32> to vector<8x1x8x8xf32>
    %3 = vector.shape_cast %2 : vector<8x1x8x8xf32> to vector<8x8x8xf32>
    %4 = vector.extract_strided_slice %1 {offsets = [0, 1, 0, 0], sizes = [8, 1, 8, 8], strides = [1, 1, 1, 1]} : vector<8x2x8x8xf32> to vector<8x1x8x8xf32>
    %5 = vector.shape_cast %4 : vector<8x1x8x8xf32> to vector<8x8x8xf32>
    %6 = arith.maximumf %3, %5 : vector<8x8x8xf32>
    %7 = vector.extract_strided_slice %6 {offsets = [0, 0, 0], sizes = [8, 8, 4], strides = [1, 1, 1]} : vector<8x8x8xf32> to vector<8x8x4xf32>
    %8 = vector.extract_strided_slice %6 {offsets = [0, 0, 4], sizes = [8, 8, 4], strides = [1, 1, 1]} : vector<8x8x8xf32> to vector<8x8x4xf32>
    %9 = arith.maximumf %7, %8 : vector<8x8x4xf32>
    %10 = arith.truncf %9 : vector<8x8x4xf32> to vector<8x8x4xbf16>
    %c0_4 = arith.constant 0 : index
    %c0_5 = arith.constant 0 : index
    %c0_6 = arith.constant 0 : index
    %c0_7 = arith.constant 0 : index
    %11 = vector.load %arg3[%c0_4, %c0_5, %c0_6, %c0_7] : memref<1x8x8x4xbf16, #tpu.memory_space<vmem>>, vector<1x8x8x4xbf16>
    %12 = vector.shape_cast %11 : vector<1x8x8x4xbf16> to vector<8x8x4xbf16>
    %13 = vector.shape_cast %10 : vector<8x8x4xbf16> to vector<1x8x8x4xbf16>
    tpu.vector_store %arg3[%c0_4, %c0_5, %c0_6, %c0_7], %13 {strides = array<i32>} : memref<1x8x8x4xbf16, #tpu.memory_space<vmem>>, vector<1x8x8x4xbf16>,
    return
  }
  func.func @transform_0(%arg0: i32, %arg1: i32) -> (i32, i32, i32, i32, i32) {
    %c0_i32 = arith.constant 0 : i32
    %c0_i32_0 = arith.constant 0 : i32
    %c0_i32_1 = arith.constant 0 : i32
    %c0_i32_2 = arith.constant 0 : i32
    return %arg0, %arg1, %c0_i32, %c0_i32_0, %c0_i32_1 : i32, i32, i32, i32, i32
  }
  func.func @transform_1(%arg0: i32, %arg1: i32) -> (i32, i32, i32, i32) {
    %c0_i32 = arith.constant 0 : i32
    %c0_i32_0 = arith.constant 0 : i32
    %c0_i32_1 = arith.constant 0 : i32
    return %arg0, %arg1, %c0_i32, %c0_i32_0 : i32, i32, i32, i32
  }
}

module attributes {stable_mosaic.version = 11 : i64} {
  func.func @conv_stats_kernel(%arg0: i32, %arg1: i32, %arg2: memref<1x1x10x4xbf16, #tpu.memory_space<vmem>>, %arg3: memref<1x1x10x4xbf16, #tpu.memory_space<vmem>>, %arg4: memref<1x1x10x4xbf16, #tpu.memory_space<vmem>>, %arg5: memref<3x3x4x128xbf16, #tpu.memory_space<vmem>>, %arg6: memref<1x128xf32, #tpu.memory_space<vmem>>, %arg7: memref<1x1x8x128xf32, #tpu.memory_space<vmem>>, %arg8: memref<1x1x2x128xf32, #tpu.memory_space<vmem>>) attributes {dimension_semantics = [#tpu.dimension_semantics<parallel>, #tpu.dimension_semantics<parallel>], iteration_bounds = array<i64: 2, 8>, scalar_prefetch = 0 : i64, scratch_operands = 0 : i64, tpu.core_type = #tpu.core_type<tc>, window_params = [{transform_indices = @transform_0, window_bounds = array<i64: 1, 1, 10, 4>}, {transform_indices = @transform_1, window_bounds = array<i64: 1, 1, 10, 4>}, {transform_indices = @transform_2, window_bounds = array<i64: 1, 1, 10, 4>}, {pipeline_mode = #tpu.pipeline_mode<synchronous>, transform_indices = @transform_3, window_bounds = array<i64: 3, 3, 4, 128>}, {pipeline_mode = #tpu.pipeline_mode<synchronous>, transform_indices = @transform_4, window_bounds = array<i64: 1, 128>}, {transform_indices = @transform_5, window_bounds = array<i64: 1, 1, 8, 128>}, {transform_indices = @transform_6, window_bounds = array<i64: 1, 1, 2, 128>}]} {
    %cst = arith.constant 0.000000e+00 : f32
    %0 = vector.broadcast %cst : f32 to vector<8x128xf32>
    %c0 = arith.constant 0 : index
    %c0_0 = arith.constant 0 : index
    %c0_1 = arith.constant 0 : index
    %c0_2 = arith.constant 0 : index
    %1 = vector.load %arg2[%c0, %c0_0, %c0_1, %c0_2] : memref<1x1x10x4xbf16, #tpu.memory_space<vmem>>, vector<1x1x10x4xbf16>
    %2 = vector.shape_cast %1 : vector<1x1x10x4xbf16> to vector<10x4xbf16>
    %c0_3 = arith.constant 0 : index
    %c0_4 = arith.constant 0 : index
    %c0_5 = arith.constant 0 : index
    %c0_6 = arith.constant 0 : index
    %3 = vector.load %arg3[%c0_3, %c0_4, %c0_5, %c0_6] : memref<1x1x10x4xbf16, #tpu.memory_space<vmem>>, vector<1x1x10x4xbf16>
    %4 = vector.shape_cast %3 : vector<1x1x10x4xbf16> to vector<10x4xbf16>
    %c0_7 = arith.constant 0 : index
    %c0_8 = arith.constant 0 : index
    %c0_9 = arith.constant 0 : index
    %c0_10 = arith.constant 0 : index
    %5 = vector.load %arg4[%c0_7, %c0_8, %c0_9, %c0_10] : memref<1x1x10x4xbf16, #tpu.memory_space<vmem>>, vector<1x1x10x4xbf16>
    %6 = vector.shape_cast %5 : vector<1x1x10x4xbf16> to vector<10x4xbf16>
    %7 = vector.extract_strided_slice %2 {offsets = [0, 0], sizes = [8, 4], strides = [1, 1]} : vector<10x4xbf16> to vector<8x4xbf16>
    %c0_11 = arith.constant 0 : index
    %c0_12 = arith.constant 0 : index
    %c0_13 = arith.constant 0 : index
    %c0_14 = arith.constant 0 : index
    %8 = vector.load %arg5[%c0_11, %c0_12, %c0_13, %c0_14] : memref<3x3x4x128xbf16, #tpu.memory_space<vmem>>, vector<1x1x4x128xbf16>
    %9 = vector.shape_cast %8 : vector<1x1x4x128xbf16> to vector<4x128xbf16>
    %cst_15 = arith.constant dense<0.000000e+00> : vector<8x128xf32>
    %10 = tpu.matmul %7, %9, %cst_15 {dimension_numbers = #tpu.dot_dimension_numbers<[1], [0], [0], [1], [0, 0, 1, 1], [], []>} : vector<8x4xbf16>, vector<4x128xbf16>, vector<8x128xf32> -> vector<8x128xf32>
    %11 = arith.addf %0, %10 : vector<8x128xf32>
    %12 = vector.extract_strided_slice %2 {offsets = [1, 0], sizes = [8, 4], strides = [1, 1]} : vector<10x4xbf16> to vector<8x4xbf16>
    %c0_16 = arith.constant 0 : index
    %c1 = arith.constant 1 : index
    %c0_17 = arith.constant 0 : index
    %c0_18 = arith.constant 0 : index
    %13 = vector.load %arg5[%c0_16, %c1, %c0_17, %c0_18] : memref<3x3x4x128xbf16, #tpu.memory_space<vmem>>, vector<1x1x4x128xbf16>
    %14 = vector.shape_cast %13 : vector<1x1x4x128xbf16> to vector<4x128xbf16>
    %cst_19 = arith.constant dense<0.000000e+00> : vector<8x128xf32>
    %15 = tpu.matmul %12, %14, %cst_19 {dimension_numbers = #tpu.dot_dimension_numbers<[1], [0], [0], [1], [0, 0, 1, 1], [], []>} : vector<8x4xbf16>, vector<4x128xbf16>, vector<8x128xf32> -> vector<8x128xf32>
    %16 = arith.addf %11, %15 : vector<8x128xf32>
    %17 = vector.extract_strided_slice %2 {offsets = [2, 0], sizes = [8, 4], strides = [1, 1]} : vector<10x4xbf16> to vector<8x4xbf16>
    %c0_20 = arith.constant 0 : index
    %c2 = arith.constant 2 : index
    %c0_21 = arith.constant 0 : index
    %c0_22 = arith.constant 0 : index
    %18 = vector.load %arg5[%c0_20, %c2, %c0_21, %c0_22] : memref<3x3x4x128xbf16, #tpu.memory_space<vmem>>, vector<1x1x4x128xbf16>
    %19 = vector.shape_cast %18 : vector<1x1x4x128xbf16> to vector<4x128xbf16>
    %cst_23 = arith.constant dense<0.000000e+00> : vector<8x128xf32>
    %20 = tpu.matmul %17, %19, %cst_23 {dimension_numbers = #tpu.dot_dimension_numbers<[1], [0], [0], [1], [0, 0, 1, 1], [], []>} : vector<8x4xbf16>, vector<4x128xbf16>, vector<8x128xf32> -> vector<8x128xf32>
    %21 = arith.addf %16, %20 : vector<8x128xf32>
    %22 = vector.extract_strided_slice %4 {offsets = [0, 0], sizes = [8, 4], strides = [1, 1]} : vector<10x4xbf16> to vector<8x4xbf16>
    %c1_24 = arith.constant 1 : index
    %c0_25 = arith.constant 0 : index
    %c0_26 = arith.constant 0 : index
    %c0_27 = arith.constant 0 : index
    %23 = vector.load %arg5[%c1_24, %c0_25, %c0_26, %c0_27] : memref<3x3x4x128xbf16, #tpu.memory_space<vmem>>, vector<1x1x4x128xbf16>
    %24 = vector.shape_cast %23 : vector<1x1x4x128xbf16> to vector<4x128xbf16>
    %cst_28 = arith.constant dense<0.000000e+00> : vector<8x128xf32>
    %25 = tpu.matmul %22, %24, %cst_28 {dimension_numbers = #tpu.dot_dimension_numbers<[1], [0], [0], [1], [0, 0, 1, 1], [], []>} : vector<8x4xbf16>, vector<4x128xbf16>, vector<8x128xf32> -> vector<8x128xf32>
    %26 = arith.addf %21, %25 : vector<8x128xf32>
    %27 = vector.extract_strided_slice %4 {offsets = [1, 0], sizes = [8, 4], strides = [1, 1]} : vector<10x4xbf16> to vector<8x4xbf16>
    %c1_29 = arith.constant 1 : index
    %c1_30 = arith.constant 1 : index
    %c0_31 = arith.constant 0 : index
    %c0_32 = arith.constant 0 : index
    %28 = vector.load %arg5[%c1_29, %c1_30, %c0_31, %c0_32] : memref<3x3x4x128xbf16, #tpu.memory_space<vmem>>, vector<1x1x4x128xbf16>
    %29 = vector.shape_cast %28 : vector<1x1x4x128xbf16> to vector<4x128xbf16>
    %cst_33 = arith.constant dense<0.000000e+00> : vector<8x128xf32>
    %30 = tpu.matmul %27, %29, %cst_33 {dimension_numbers = #tpu.dot_dimension_numbers<[1], [0], [0], [1], [0, 0, 1, 1], [], []>} : vector<8x4xbf16>, vector<4x128xbf16>, vector<8x128xf32> -> vector<8x128xf32>
    %31 = arith.addf %26, %30 : vector<8x128xf32>
    %32 = vector.extract_strided_slice %4 {offsets = [2, 0], sizes = [8, 4], strides = [1, 1]} : vector<10x4xbf16> to vector<8x4xbf16>
    %c1_34 = arith.constant 1 : index
    %c2_35 = arith.constant 2 : index
    %c0_36 = arith.constant 0 : index
    %c0_37 = arith.constant 0 : index
    %33 = vector.load %arg5[%c1_34, %c2_35, %c0_36, %c0_37] : memref<3x3x4x128xbf16, #tpu.memory_space<vmem>>, vector<1x1x4x128xbf16>
    %34 = vector.shape_cast %33 : vector<1x1x4x128xbf16> to vector<4x128xbf16>
    %cst_38 = arith.constant dense<0.000000e+00> : vector<8x128xf32>
    %35 = tpu.matmul %32, %34, %cst_38 {dimension_numbers = #tpu.dot_dimension_numbers<[1], [0], [0], [1], [0, 0, 1, 1], [], []>} : vector<8x4xbf16>, vector<4x128xbf16>, vector<8x128xf32> -> vector<8x128xf32>
    %36 = arith.addf %31, %35 : vector<8x128xf32>
    %37 = vector.extract_strided_slice %6 {offsets = [0, 0], sizes = [8, 4], strides = [1, 1]} : vector<10x4xbf16> to vector<8x4xbf16>
    %c2_39 = arith.constant 2 : index
    %c0_40 = arith.constant 0 : index
    %c0_41 = arith.constant 0 : index
    %c0_42 = arith.constant 0 : index
    %38 = vector.load %arg5[%c2_39, %c0_40, %c0_41, %c0_42] : memref<3x3x4x128xbf16, #tpu.memory_space<vmem>>, vector<1x1x4x128xbf16>
    %39 = vector.shape_cast %38 : vector<1x1x4x128xbf16> to vector<4x128xbf16>
    %cst_43 = arith.constant dense<0.000000e+00> : vector<8x128xf32>
    %40 = tpu.matmul %37, %39, %cst_43 {dimension_numbers = #tpu.dot_dimension_numbers<[1], [0], [0], [1], [0, 0, 1, 1], [], []>} : vector<8x4xbf16>, vector<4x128xbf16>, vector<8x128xf32> -> vector<8x128xf32>
    %41 = arith.addf %36, %40 : vector<8x128xf32>
    %42 = vector.extract_strided_slice %6 {offsets = [1, 0], sizes = [8, 4], strides = [1, 1]} : vector<10x4xbf16> to vector<8x4xbf16>
    %c2_44 = arith.constant 2 : index
    %c1_45 = arith.constant 1 : index
    %c0_46 = arith.constant 0 : index
    %c0_47 = arith.constant 0 : index
    %43 = vector.load %arg5[%c2_44, %c1_45, %c0_46, %c0_47] : memref<3x3x4x128xbf16, #tpu.memory_space<vmem>>, vector<1x1x4x128xbf16>
    %44 = vector.shape_cast %43 : vector<1x1x4x128xbf16> to vector<4x128xbf16>
    %cst_48 = arith.constant dense<0.000000e+00> : vector<8x128xf32>
    %45 = tpu.matmul %42, %44, %cst_48 {dimension_numbers = #tpu.dot_dimension_numbers<[1], [0], [0], [1], [0, 0, 1, 1], [], []>} : vector<8x4xbf16>, vector<4x128xbf16>, vector<8x128xf32> -> vector<8x128xf32>
    %46 = arith.addf %41, %45 : vector<8x128xf32>
    %47 = vector.extract_strided_slice %6 {offsets = [2, 0], sizes = [8, 4], strides = [1, 1]} : vector<10x4xbf16> to vector<8x4xbf16>
    %c2_49 = arith.constant 2 : index
    %c2_50 = arith.constant 2 : index
    %c0_51 = arith.constant 0 : index
    %c0_52 = arith.constant 0 : index
    %48 = vector.load %arg5[%c2_49, %c2_50, %c0_51, %c0_52] : memref<3x3x4x128xbf16, #tpu.memory_space<vmem>>, vector<1x1x4x128xbf16>
    %49 = vector.shape_cast %48 : vector<1x1x4x128xbf16> to vector<4x128xbf16>
    %cst_53 = arith.constant dense<0.000000e+00> : vector<8x128xf32>
    %50 = tpu.matmul %47, %49, %cst_53 {dimension_numbers = #tpu.dot_dimension_numbers<[1], [0], [0], [1], [0, 0, 1, 1], [], []>} : vector<8x4xbf16>, vector<4x128xbf16>, vector<8x128xf32> -> vector<8x128xf32>
    %51 = arith.addf %46, %50 : vector<8x128xf32>
    %c0_54 = arith.constant 0 : index
    %c0_55 = arith.constant 0 : index
    %52 = vector.load %arg6[%c0_54, %c0_55] : memref<1x128xf32, #tpu.memory_space<vmem>>, vector<1x128xf32>
    %53 = vector.broadcast %52 : vector<1x128xf32> to vector<8x128xf32>
    %54 = arith.addf %51, %53 : vector<8x128xf32>
    %c0_56 = arith.constant 0 : index
    %c0_57 = arith.constant 0 : index
    %c0_58 = arith.constant 0 : index
    %c0_59 = arith.constant 0 : index
    %55 = vector.load %arg7[%c0_56, %c0_57, %c0_58, %c0_59] : memref<1x1x8x128xf32, #tpu.memory_space<vmem>>, vector<1x1x8x128xf32>
    %56 = vector.shape_cast %55 : vector<1x1x8x128xf32> to vector<8x128xf32>
    %57 = vector.shape_cast %54 : vector<8x128xf32> to vector<1x1x8x128xf32>
    tpu.vector_store %arg7[%c0_56, %c0_57, %c0_58, %c0_59], %57 {strides = array<i32>} : memref<1x1x8x128xf32, #tpu.memory_space<vmem>>, vector<1x1x8x128xf32>,
    %cst_60 = arith.constant dense<0.000000e+00> : vector<128xf32>
    %58 = vector.multi_reduction <add>, %54, %cst_60 [0] : vector<8x128xf32> to vector<128xf32>
    %59 = vector.shape_cast %58 : vector<128xf32> to vector<1x128xf32>
    %c0_61 = arith.constant 0 : index
    %c0_62 = arith.constant 0 : index
    %c0_63 = arith.constant 0 : index
    %c0_64 = arith.constant 0 : index
    %60 = vector.load %arg8[%c0_61, %c0_62, %c0_63, %c0_64] : memref<1x1x2x128xf32, #tpu.memory_space<vmem>>, vector<1x1x1x128xf32>
    %61 = vector.shape_cast %60 : vector<1x1x1x128xf32> to vector<1x128xf32>
    %62 = vector.shape_cast %59 : vector<1x128xf32> to vector<1x1x1x128xf32>
    tpu.vector_store %arg8[%c0_61, %c0_62, %c0_63, %c0_64], %62 {strides = array<i32>} : memref<1x1x2x128xf32, #tpu.memory_space<vmem>>, vector<1x1x1x128xf32>,
    %63 = arith.mulf %54, %54 : vector<8x128xf32>
    %cst_65 = arith.constant dense<0.000000e+00> : vector<128xf32>
    %64 = vector.multi_reduction <add>, %63, %cst_65 [0] : vector<8x128xf32> to vector<128xf32>
    %65 = vector.shape_cast %64 : vector<128xf32> to vector<1x128xf32>
    %c0_66 = arith.constant 0 : index
    %c0_67 = arith.constant 0 : index
    %c1_68 = arith.constant 1 : index
    %c0_69 = arith.constant 0 : index
    %66 = vector.load %arg8[%c0_66, %c0_67, %c1_68, %c0_69] : memref<1x1x2x128xf32, #tpu.memory_space<vmem>>, vector<1x1x1x128xf32>
    %67 = vector.shape_cast %66 : vector<1x1x1x128xf32> to vector<1x128xf32>
    %68 = vector.shape_cast %65 : vector<1x128xf32> to vector<1x1x1x128xf32>
    tpu.vector_store %arg8[%c0_66, %c0_67, %c1_68, %c0_69], %68 {strides = array<i32>} : memref<1x1x2x128xf32, #tpu.memory_space<vmem>>, vector<1x1x1x128xf32>,
    return
  }
  func.func @transform_0(%arg0: i32, %arg1: i32) -> (i32, i32, i32, i32) {
    %c0_i32 = arith.constant 0 : i32
    %0 = arith.addi %arg1, %c0_i32 : i32
    %c0_i32_0 = arith.constant 0 : i32
    %c0_i32_1 = arith.constant 0 : i32
    %c0_i32_2 = arith.constant 0 : i32
    return %arg0, %0, %c0_i32_0, %c0_i32_1 : i32, i32, i32, i32
  }
  func.func @transform_1(%arg0: i32, %arg1: i32) -> (i32, i32, i32, i32) {
    %c1_i32 = arith.constant 1 : i32
    %0 = arith.addi %arg1, %c1_i32 : i32
    %c0_i32 = arith.constant 0 : i32
    %c0_i32_0 = arith.constant 0 : i32
    %c0_i32_1 = arith.constant 0 : i32
    return %arg0, %0, %c0_i32, %c0_i32_0 : i32, i32, i32, i32
  }
  func.func @transform_2(%arg0: i32, %arg1: i32) -> (i32, i32, i32, i32) {
    %c2_i32 = arith.constant 2 : i32
    %0 = arith.addi %arg1, %c2_i32 : i32
    %c0_i32 = arith.constant 0 : i32
    %c0_i32_0 = arith.constant 0 : i32
    %c0_i32_1 = arith.constant 0 : i32
    return %arg0, %0, %c0_i32, %c0_i32_0 : i32, i32, i32, i32
  }
  func.func @transform_3(%arg0: i32, %arg1: i32) -> (i32, i32, i32, i32) {
    %c0_i32 = arith.constant 0 : i32
    %c0_i32_0 = arith.constant 0 : i32
    %c0_i32_1 = arith.constant 0 : i32
    %c0_i32_2 = arith.constant 0 : i32
    %c0_i32_3 = arith.constant 0 : i32
    return %c0_i32, %c0_i32_0, %c0_i32_1, %c0_i32_2 : i32, i32, i32, i32
  }
  func.func @transform_4(%arg0: i32, %arg1: i32) -> (i32, i32) {
    %c0_i32 = arith.constant 0 : i32
    %c0_i32_0 = arith.constant 0 : i32
    %c0_i32_1 = arith.constant 0 : i32
    return %c0_i32, %c0_i32_0 : i32, i32
  }
  func.func @transform_5(%arg0: i32, %arg1: i32) -> (i32, i32, i32, i32) {
    %c0_i32 = arith.constant 0 : i32
    %c0_i32_0 = arith.constant 0 : i32
    %c0_i32_1 = arith.constant 0 : i32
    return %arg0, %arg1, %c0_i32, %c0_i32_0 : i32, i32, i32, i32
  }
  func.func @transform_6(%arg0: i32, %arg1: i32) -> (i32, i32, i32, i32) {
    %c0_i32 = arith.constant 0 : i32
    %c0_i32_0 = arith.constant 0 : i32
    %c0_i32_1 = arith.constant 0 : i32
    return %arg0, %arg1, %c0_i32, %c0_i32_0 : i32, i32, i32, i32
  }
}

module attributes {stable_mosaic.version = 11 : i64} {
  func.func @bn_relu_kernel(%arg0: i32, %arg1: i32, %arg2: memref<1x1x8x128xf32, #tpu.memory_space<vmem>>, %arg3: memref<1x128xf32, #tpu.memory_space<vmem>>, %arg4: memref<1x128xf32, #tpu.memory_space<vmem>>, %arg5: memref<1x1x8x128xbf16, #tpu.memory_space<vmem>>) attributes {dimension_semantics = [#tpu.dimension_semantics<parallel>, #tpu.dimension_semantics<parallel>], iteration_bounds = array<i64: 2, 8>, scalar_prefetch = 0 : i64, scratch_operands = 0 : i64, tpu.core_type = #tpu.core_type<tc>, window_params = [{transform_indices = @transform_0, window_bounds = array<i64: 1, 1, 8, 128>}, {pipeline_mode = #tpu.pipeline_mode<synchronous>, transform_indices = @transform_1, window_bounds = array<i64: 1, 128>}, {pipeline_mode = #tpu.pipeline_mode<synchronous>, transform_indices = @transform_2, window_bounds = array<i64: 1, 128>}, {transform_indices = @transform_3, window_bounds = array<i64: 1, 1, 8, 128>}]} {
    %c0 = arith.constant 0 : index
    %c0_0 = arith.constant 0 : index
    %c0_1 = arith.constant 0 : index
    %c0_2 = arith.constant 0 : index
    %0 = vector.load %arg2[%c0, %c0_0, %c0_1, %c0_2] : memref<1x1x8x128xf32, #tpu.memory_space<vmem>>, vector<1x1x8x128xf32>
    %1 = vector.shape_cast %0 : vector<1x1x8x128xf32> to vector<8x128xf32>
    %c0_3 = arith.constant 0 : index
    %c0_4 = arith.constant 0 : index
    %2 = vector.load %arg3[%c0_3, %c0_4] : memref<1x128xf32, #tpu.memory_space<vmem>>, vector<1x128xf32>
    %3 = vector.broadcast %2 : vector<1x128xf32> to vector<8x128xf32>
    %4 = arith.mulf %1, %3 : vector<8x128xf32>
    %c0_5 = arith.constant 0 : index
    %c0_6 = arith.constant 0 : index
    %5 = vector.load %arg4[%c0_5, %c0_6] : memref<1x128xf32, #tpu.memory_space<vmem>>, vector<1x128xf32>
    %6 = vector.broadcast %5 : vector<1x128xf32> to vector<8x128xf32>
    %7 = arith.addf %4, %6 : vector<8x128xf32>
    %cst = arith.constant 0.000000e+00 : f32
    %8 = vector.broadcast %cst : f32 to vector<8x128xf32>
    %9 = arith.maximumf %7, %8 : vector<8x128xf32>
    %10 = arith.truncf %9 : vector<8x128xf32> to vector<8x128xbf16>
    %c0_7 = arith.constant 0 : index
    %c0_8 = arith.constant 0 : index
    %c0_9 = arith.constant 0 : index
    %c0_10 = arith.constant 0 : index
    %11 = vector.load %arg5[%c0_7, %c0_8, %c0_9, %c0_10] : memref<1x1x8x128xbf16, #tpu.memory_space<vmem>>, vector<1x1x8x128xbf16>
    %12 = vector.shape_cast %11 : vector<1x1x8x128xbf16> to vector<8x128xbf16>
    %13 = vector.shape_cast %10 : vector<8x128xbf16> to vector<1x1x8x128xbf16>
    tpu.vector_store %arg5[%c0_7, %c0_8, %c0_9, %c0_10], %13 {strides = array<i32>} : memref<1x1x8x128xbf16, #tpu.memory_space<vmem>>, vector<1x1x8x128xbf16>,
    return
  }
  func.func @transform_0(%arg0: i32, %arg1: i32) -> (i32, i32, i32, i32) {
    %c0_i32 = arith.constant 0 : i32
    %c0_i32_0 = arith.constant 0 : i32
    %c0_i32_1 = arith.constant 0 : i32
    return %arg0, %arg1, %c0_i32, %c0_i32_0 : i32, i32, i32, i32
  }
  func.func @transform_1(%arg0: i32, %arg1: i32) -> (i32, i32) {
    %c0_i32 = arith.constant 0 : i32
    %c0_i32_0 = arith.constant 0 : i32
    %c0_i32_1 = arith.constant 0 : i32
    return %c0_i32, %c0_i32_0 : i32, i32
  }
  func.func @transform_2(%arg0: i32, %arg1: i32) -> (i32, i32) {
    %c0_i32 = arith.constant 0 : i32
    %c0_i32_0 = arith.constant 0 : i32
    %c0_i32_1 = arith.constant 0 : i32
    return %c0_i32, %c0_i32_0 : i32, i32
  }
  func.func @transform_3(%arg0: i32, %arg1: i32) -> (i32, i32, i32, i32) {
    %c0_i32 = arith.constant 0 : i32
    %c0_i32_0 = arith.constant 0 : i32
    %c0_i32_1 = arith.constant 0 : i32
    return %arg0, %arg1, %c0_i32, %c0_i32_0 : i32, i32, i32, i32
  }
}

module attributes {stable_mosaic.version = 11 : i64} {
  func.func @bn_relu_kernel(%arg0: i32, %arg1: i32, %arg2: memref<1x1x8x128xf32, #tpu.memory_space<vmem>>, %arg3: memref<1x128xf32, #tpu.memory_space<vmem>>, %arg4: memref<1x128xf32, #tpu.memory_space<vmem>>, %arg5: memref<1x1x8x128xf32, #tpu.memory_space<vmem>>) attributes {dimension_semantics = [#tpu.dimension_semantics<parallel>, #tpu.dimension_semantics<parallel>], iteration_bounds = array<i64: 2, 8>, scalar_prefetch = 0 : i64, scratch_operands = 0 : i64, tpu.core_type = #tpu.core_type<tc>, window_params = [{transform_indices = @transform_0, window_bounds = array<i64: 1, 1, 8, 128>}, {pipeline_mode = #tpu.pipeline_mode<synchronous>, transform_indices = @transform_1, window_bounds = array<i64: 1, 128>}, {pipeline_mode = #tpu.pipeline_mode<synchronous>, transform_indices = @transform_2, window_bounds = array<i64: 1, 128>}, {transform_indices = @transform_3, window_bounds = array<i64: 1, 1, 8, 128>}]} {
    %c0 = arith.constant 0 : index
    %c0_0 = arith.constant 0 : index
    %c0_1 = arith.constant 0 : index
    %c0_2 = arith.constant 0 : index
    %0 = vector.load %arg2[%c0, %c0_0, %c0_1, %c0_2] : memref<1x1x8x128xf32, #tpu.memory_space<vmem>>, vector<1x1x8x128xf32>
    %1 = vector.shape_cast %0 : vector<1x1x8x128xf32> to vector<8x128xf32>
    %c0_3 = arith.constant 0 : index
    %c0_4 = arith.constant 0 : index
    %2 = vector.load %arg3[%c0_3, %c0_4] : memref<1x128xf32, #tpu.memory_space<vmem>>, vector<1x128xf32>
    %3 = vector.broadcast %2 : vector<1x128xf32> to vector<8x128xf32>
    %4 = arith.mulf %1, %3 : vector<8x128xf32>
    %c0_5 = arith.constant 0 : index
    %c0_6 = arith.constant 0 : index
    %5 = vector.load %arg4[%c0_5, %c0_6] : memref<1x128xf32, #tpu.memory_space<vmem>>, vector<1x128xf32>
    %6 = vector.broadcast %5 : vector<1x128xf32> to vector<8x128xf32>
    %7 = arith.addf %4, %6 : vector<8x128xf32>
    %cst = arith.constant 0.000000e+00 : f32
    %8 = vector.broadcast %cst : f32 to vector<8x128xf32>
    %9 = arith.maximumf %7, %8 : vector<8x128xf32>
    %c0_7 = arith.constant 0 : index
    %c0_8 = arith.constant 0 : index
    %c0_9 = arith.constant 0 : index
    %c0_10 = arith.constant 0 : index
    %10 = vector.load %arg5[%c0_7, %c0_8, %c0_9, %c0_10] : memref<1x1x8x128xf32, #tpu.memory_space<vmem>>, vector<1x1x8x128xf32>
    %11 = vector.shape_cast %10 : vector<1x1x8x128xf32> to vector<8x128xf32>
    %12 = vector.shape_cast %9 : vector<8x128xf32> to vector<1x1x8x128xf32>
    tpu.vector_store %arg5[%c0_7, %c0_8, %c0_9, %c0_10], %12 {strides = array<i32>} : memref<1x1x8x128xf32, #tpu.memory_space<vmem>>, vector<1x1x8x128xf32>,
    return
  }
  func.func @transform_0(%arg0: i32, %arg1: i32) -> (i32, i32, i32, i32) {
    %c0_i32 = arith.constant 0 : i32
    %c0_i32_0 = arith.constant 0 : i32
    %c0_i32_1 = arith.constant 0 : i32
    return %arg0, %arg1, %c0_i32, %c0_i32_0 : i32, i32, i32, i32
  }
  func.func @transform_1(%arg0: i32, %arg1: i32) -> (i32, i32) {
    %c0_i32 = arith.constant 0 : i32
    %c0_i32_0 = arith.constant 0 : i32
    %c0_i32_1 = arith.constant 0 : i32
    return %c0_i32, %c0_i32_0 : i32, i32
  }
  func.func @transform_2(%arg0: i32, %arg1: i32) -> (i32, i32) {
    %c0_i32 = arith.constant 0 : i32
    %c0_i32_0 = arith.constant 0 : i32
    %c0_i32_1 = arith.constant 0 : i32
    return %c0_i32, %c0_i32_0 : i32, i32
  }
  func.func @transform_3(%arg0: i32, %arg1: i32) -> (i32, i32, i32, i32) {
    %c0_i32 = arith.constant 0 : i32
    %c0_i32_0 = arith.constant 0 : i32
    %c0_i32_1 = arith.constant 0 : i32
    return %arg0, %arg1, %c0_i32, %c0_i32_0 : i32, i32, i32, i32
  }
}

module attributes {stable_mosaic.version = 11 : i64} {
  func.func @conv_stats_kernel(%arg0: i32, %arg1: i32, %arg2: memref<1x1x10x128xbf16, #tpu.memory_space<vmem>>, %arg3: memref<1x1x10x128xbf16, #tpu.memory_space<vmem>>, %arg4: memref<1x1x10x128xbf16, #tpu.memory_space<vmem>>, %arg5: memref<3x3x128x128xbf16, #tpu.memory_space<vmem>>, %arg6: memref<1x128xf32, #tpu.memory_space<vmem>>, %arg7: memref<1x1x8x128xf32, #tpu.memory_space<vmem>>, %arg8: memref<1x1x2x128xf32, #tpu.memory_space<vmem>>) attributes {dimension_semantics = [#tpu.dimension_semantics<parallel>, #tpu.dimension_semantics<parallel>], iteration_bounds = array<i64: 2, 8>, scalar_prefetch = 0 : i64, scratch_operands = 0 : i64, tpu.core_type = #tpu.core_type<tc>, window_params = [{transform_indices = @transform_0, window_bounds = array<i64: 1, 1, 10, 128>}, {transform_indices = @transform_1, window_bounds = array<i64: 1, 1, 10, 128>}, {transform_indices = @transform_2, window_bounds = array<i64: 1, 1, 10, 128>}, {pipeline_mode = #tpu.pipeline_mode<synchronous>, transform_indices = @transform_3, window_bounds = array<i64: 3, 3, 128, 128>}, {pipeline_mode = #tpu.pipeline_mode<synchronous>, transform_indices = @transform_4, window_bounds = array<i64: 1, 128>}, {transform_indices = @transform_5, window_bounds = array<i64: 1, 1, 8, 128>}, {transform_indices = @transform_6, window_bounds = array<i64: 1, 1, 2, 128>}]} {
    %cst = arith.constant 0.000000e+00 : f32
    %0 = vector.broadcast %cst : f32 to vector<8x128xf32>
    %c0 = arith.constant 0 : index
    %c0_0 = arith.constant 0 : index
    %c0_1 = arith.constant 0 : index
    %c0_2 = arith.constant 0 : index
    %1 = vector.load %arg2[%c0, %c0_0, %c0_1, %c0_2] : memref<1x1x10x128xbf16, #tpu.memory_space<vmem>>, vector<1x1x10x128xbf16>
    %2 = vector.shape_cast %1 : vector<1x1x10x128xbf16> to vector<10x128xbf16>
    %c0_3 = arith.constant 0 : index
    %c0_4 = arith.constant 0 : index
    %c0_5 = arith.constant 0 : index
    %c0_6 = arith.constant 0 : index
    %3 = vector.load %arg3[%c0_3, %c0_4, %c0_5, %c0_6] : memref<1x1x10x128xbf16, #tpu.memory_space<vmem>>, vector<1x1x10x128xbf16>
    %4 = vector.shape_cast %3 : vector<1x1x10x128xbf16> to vector<10x128xbf16>
    %c0_7 = arith.constant 0 : index
    %c0_8 = arith.constant 0 : index
    %c0_9 = arith.constant 0 : index
    %c0_10 = arith.constant 0 : index
    %5 = vector.load %arg4[%c0_7, %c0_8, %c0_9, %c0_10] : memref<1x1x10x128xbf16, #tpu.memory_space<vmem>>, vector<1x1x10x128xbf16>
    %6 = vector.shape_cast %5 : vector<1x1x10x128xbf16> to vector<10x128xbf16>
    %7 = vector.extract_strided_slice %2 {offsets = [0, 0], sizes = [8, 128], strides = [1, 1]} : vector<10x128xbf16> to vector<8x128xbf16>
    %c0_11 = arith.constant 0 : index
    %c0_12 = arith.constant 0 : index
    %c0_13 = arith.constant 0 : index
    %c0_14 = arith.constant 0 : index
    %8 = vector.load %arg5[%c0_11, %c0_12, %c0_13, %c0_14] : memref<3x3x128x128xbf16, #tpu.memory_space<vmem>>, vector<1x1x128x128xbf16>
    %9 = vector.shape_cast %8 : vector<1x1x128x128xbf16> to vector<128x128xbf16>
    %cst_15 = arith.constant dense<0.000000e+00> : vector<8x128xf32>
    %10 = tpu.matmul %7, %9, %cst_15 {dimension_numbers = #tpu.dot_dimension_numbers<[1], [0], [0], [1], [0, 0, 1, 1], [], []>} : vector<8x128xbf16>, vector<128x128xbf16>, vector<8x128xf32> -> vector<8x128xf32>
    %11 = arith.addf %0, %10 : vector<8x128xf32>
    %12 = vector.extract_strided_slice %2 {offsets = [1, 0], sizes = [8, 128], strides = [1, 1]} : vector<10x128xbf16> to vector<8x128xbf16>
    %c0_16 = arith.constant 0 : index
    %c1 = arith.constant 1 : index
    %c0_17 = arith.constant 0 : index
    %c0_18 = arith.constant 0 : index
    %13 = vector.load %arg5[%c0_16, %c1, %c0_17, %c0_18] : memref<3x3x128x128xbf16, #tpu.memory_space<vmem>>, vector<1x1x128x128xbf16>
    %14 = vector.shape_cast %13 : vector<1x1x128x128xbf16> to vector<128x128xbf16>
    %cst_19 = arith.constant dense<0.000000e+00> : vector<8x128xf32>
    %15 = tpu.matmul %12, %14, %cst_19 {dimension_numbers = #tpu.dot_dimension_numbers<[1], [0], [0], [1], [0, 0, 1, 1], [], []>} : vector<8x128xbf16>, vector<128x128xbf16>, vector<8x128xf32> -> vector<8x128xf32>
    %16 = arith.addf %11, %15 : vector<8x128xf32>
    %17 = vector.extract_strided_slice %2 {offsets = [2, 0], sizes = [8, 128], strides = [1, 1]} : vector<10x128xbf16> to vector<8x128xbf16>
    %c0_20 = arith.constant 0 : index
    %c2 = arith.constant 2 : index
    %c0_21 = arith.constant 0 : index
    %c0_22 = arith.constant 0 : index
    %18 = vector.load %arg5[%c0_20, %c2, %c0_21, %c0_22] : memref<3x3x128x128xbf16, #tpu.memory_space<vmem>>, vector<1x1x128x128xbf16>
    %19 = vector.shape_cast %18 : vector<1x1x128x128xbf16> to vector<128x128xbf16>
    %cst_23 = arith.constant dense<0.000000e+00> : vector<8x128xf32>
    %20 = tpu.matmul %17, %19, %cst_23 {dimension_numbers = #tpu.dot_dimension_numbers<[1], [0], [0], [1], [0, 0, 1, 1], [], []>} : vector<8x128xbf16>, vector<128x128xbf16>, vector<8x128xf32> -> vector<8x128xf32>
    %21 = arith.addf %16, %20 : vector<8x128xf32>
    %22 = vector.extract_strided_slice %4 {offsets = [0, 0], sizes = [8, 128], strides = [1, 1]} : vector<10x128xbf16> to vector<8x128xbf16>
    %c1_24 = arith.constant 1 : index
    %c0_25 = arith.constant 0 : index
    %c0_26 = arith.constant 0 : index
    %c0_27 = arith.constant 0 : index
    %23 = vector.load %arg5[%c1_24, %c0_25, %c0_26, %c0_27] : memref<3x3x128x128xbf16, #tpu.memory_space<vmem>>, vector<1x1x128x128xbf16>
    %24 = vector.shape_cast %23 : vector<1x1x128x128xbf16> to vector<128x128xbf16>
    %cst_28 = arith.constant dense<0.000000e+00> : vector<8x128xf32>
    %25 = tpu.matmul %22, %24, %cst_28 {dimension_numbers = #tpu.dot_dimension_numbers<[1], [0], [0], [1], [0, 0, 1, 1], [], []>} : vector<8x128xbf16>, vector<128x128xbf16>, vector<8x128xf32> -> vector<8x128xf32>
    %26 = arith.addf %21, %25 : vector<8x128xf32>
    %27 = vector.extract_strided_slice %4 {offsets = [1, 0], sizes = [8, 128], strides = [1, 1]} : vector<10x128xbf16> to vector<8x128xbf16>
    %c1_29 = arith.constant 1 : index
    %c1_30 = arith.constant 1 : index
    %c0_31 = arith.constant 0 : index
    %c0_32 = arith.constant 0 : index
    %28 = vector.load %arg5[%c1_29, %c1_30, %c0_31, %c0_32] : memref<3x3x128x128xbf16, #tpu.memory_space<vmem>>, vector<1x1x128x128xbf16>
    %29 = vector.shape_cast %28 : vector<1x1x128x128xbf16> to vector<128x128xbf16>
    %cst_33 = arith.constant dense<0.000000e+00> : vector<8x128xf32>
    %30 = tpu.matmul %27, %29, %cst_33 {dimension_numbers = #tpu.dot_dimension_numbers<[1], [0], [0], [1], [0, 0, 1, 1], [], []>} : vector<8x128xbf16>, vector<128x128xbf16>, vector<8x128xf32> -> vector<8x128xf32>
    %31 = arith.addf %26, %30 : vector<8x128xf32>
    %32 = vector.extract_strided_slice %4 {offsets = [2, 0], sizes = [8, 128], strides = [1, 1]} : vector<10x128xbf16> to vector<8x128xbf16>
    %c1_34 = arith.constant 1 : index
    %c2_35 = arith.constant 2 : index
    %c0_36 = arith.constant 0 : index
    %c0_37 = arith.constant 0 : index
    %33 = vector.load %arg5[%c1_34, %c2_35, %c0_36, %c0_37] : memref<3x3x128x128xbf16, #tpu.memory_space<vmem>>, vector<1x1x128x128xbf16>
    %34 = vector.shape_cast %33 : vector<1x1x128x128xbf16> to vector<128x128xbf16>
    %cst_38 = arith.constant dense<0.000000e+00> : vector<8x128xf32>
    %35 = tpu.matmul %32, %34, %cst_38 {dimension_numbers = #tpu.dot_dimension_numbers<[1], [0], [0], [1], [0, 0, 1, 1], [], []>} : vector<8x128xbf16>, vector<128x128xbf16>, vector<8x128xf32> -> vector<8x128xf32>
    %36 = arith.addf %31, %35 : vector<8x128xf32>
    %37 = vector.extract_strided_slice %6 {offsets = [0, 0], sizes = [8, 128], strides = [1, 1]} : vector<10x128xbf16> to vector<8x128xbf16>
    %c2_39 = arith.constant 2 : index
    %c0_40 = arith.constant 0 : index
    %c0_41 = arith.constant 0 : index
    %c0_42 = arith.constant 0 : index
    %38 = vector.load %arg5[%c2_39, %c0_40, %c0_41, %c0_42] : memref<3x3x128x128xbf16, #tpu.memory_space<vmem>>, vector<1x1x128x128xbf16>
    %39 = vector.shape_cast %38 : vector<1x1x128x128xbf16> to vector<128x128xbf16>
    %cst_43 = arith.constant dense<0.000000e+00> : vector<8x128xf32>
    %40 = tpu.matmul %37, %39, %cst_43 {dimension_numbers = #tpu.dot_dimension_numbers<[1], [0], [0], [1], [0, 0, 1, 1], [], []>} : vector<8x128xbf16>, vector<128x128xbf16>, vector<8x128xf32> -> vector<8x128xf32>
    %41 = arith.addf %36, %40 : vector<8x128xf32>
    %42 = vector.extract_strided_slice %6 {offsets = [1, 0], sizes = [8, 128], strides = [1, 1]} : vector<10x128xbf16> to vector<8x128xbf16>
    %c2_44 = arith.constant 2 : index
    %c1_45 = arith.constant 1 : index
    %c0_46 = arith.constant 0 : index
    %c0_47 = arith.constant 0 : index
    %43 = vector.load %arg5[%c2_44, %c1_45, %c0_46, %c0_47] : memref<3x3x128x128xbf16, #tpu.memory_space<vmem>>, vector<1x1x128x128xbf16>
    %44 = vector.shape_cast %43 : vector<1x1x128x128xbf16> to vector<128x128xbf16>
    %cst_48 = arith.constant dense<0.000000e+00> : vector<8x128xf32>
    %45 = tpu.matmul %42, %44, %cst_48 {dimension_numbers = #tpu.dot_dimension_numbers<[1], [0], [0], [1], [0, 0, 1, 1], [], []>} : vector<8x128xbf16>, vector<128x128xbf16>, vector<8x128xf32> -> vector<8x128xf32>
    %46 = arith.addf %41, %45 : vector<8x128xf32>
    %47 = vector.extract_strided_slice %6 {offsets = [2, 0], sizes = [8, 128], strides = [1, 1]} : vector<10x128xbf16> to vector<8x128xbf16>
    %c2_49 = arith.constant 2 : index
    %c2_50 = arith.constant 2 : index
    %c0_51 = arith.constant 0 : index
    %c0_52 = arith.constant 0 : index
    %48 = vector.load %arg5[%c2_49, %c2_50, %c0_51, %c0_52] : memref<3x3x128x128xbf16, #tpu.memory_space<vmem>>, vector<1x1x128x128xbf16>
    %49 = vector.shape_cast %48 : vector<1x1x128x128xbf16> to vector<128x128xbf16>
    %cst_53 = arith.constant dense<0.000000e+00> : vector<8x128xf32>
    %50 = tpu.matmul %47, %49, %cst_53 {dimension_numbers = #tpu.dot_dimension_numbers<[1], [0], [0], [1], [0, 0, 1, 1], [], []>} : vector<8x128xbf16>, vector<128x128xbf16>, vector<8x128xf32> -> vector<8x128xf32>
    %51 = arith.addf %46, %50 : vector<8x128xf32>
    %c0_54 = arith.constant 0 : index
    %c0_55 = arith.constant 0 : index
    %52 = vector.load %arg6[%c0_54, %c0_55] : memref<1x128xf32, #tpu.memory_space<vmem>>, vector<1x128xf32>
    %53 = vector.broadcast %52 : vector<1x128xf32> to vector<8x128xf32>
    %54 = arith.addf %51, %53 : vector<8x128xf32>
    %c0_56 = arith.constant 0 : index
    %c0_57 = arith.constant 0 : index
    %c0_58 = arith.constant 0 : index
    %c0_59 = arith.constant 0 : index
    %55 = vector.load %arg7[%c0_56, %c0_57, %c0_58, %c0_59] : memref<1x1x8x128xf32, #tpu.memory_space<vmem>>, vector<1x1x8x128xf32>
    %56 = vector.shape_cast %55 : vector<1x1x8x128xf32> to vector<8x128xf32>
    %57 = vector.shape_cast %54 : vector<8x128xf32> to vector<1x1x8x128xf32>
    tpu.vector_store %arg7[%c0_56, %c0_57, %c0_58, %c0_59], %57 {strides = array<i32>} : memref<1x1x8x128xf32, #tpu.memory_space<vmem>>, vector<1x1x8x128xf32>,
    %cst_60 = arith.constant dense<0.000000e+00> : vector<128xf32>
    %58 = vector.multi_reduction <add>, %54, %cst_60 [0] : vector<8x128xf32> to vector<128xf32>
    %59 = vector.shape_cast %58 : vector<128xf32> to vector<1x128xf32>
    %c0_61 = arith.constant 0 : index
    %c0_62 = arith.constant 0 : index
    %c0_63 = arith.constant 0 : index
    %c0_64 = arith.constant 0 : index
    %60 = vector.load %arg8[%c0_61, %c0_62, %c0_63, %c0_64] : memref<1x1x2x128xf32, #tpu.memory_space<vmem>>, vector<1x1x1x128xf32>
    %61 = vector.shape_cast %60 : vector<1x1x1x128xf32> to vector<1x128xf32>
    %62 = vector.shape_cast %59 : vector<1x128xf32> to vector<1x1x1x128xf32>
    tpu.vector_store %arg8[%c0_61, %c0_62, %c0_63, %c0_64], %62 {strides = array<i32>} : memref<1x1x2x128xf32, #tpu.memory_space<vmem>>, vector<1x1x1x128xf32>,
    %63 = arith.mulf %54, %54 : vector<8x128xf32>
    %cst_65 = arith.constant dense<0.000000e+00> : vector<128xf32>
    %64 = vector.multi_reduction <add>, %63, %cst_65 [0] : vector<8x128xf32> to vector<128xf32>
    %65 = vector.shape_cast %64 : vector<128xf32> to vector<1x128xf32>
    %c0_66 = arith.constant 0 : index
    %c0_67 = arith.constant 0 : index
    %c1_68 = arith.constant 1 : index
    %c0_69 = arith.constant 0 : index
    %66 = vector.load %arg8[%c0_66, %c0_67, %c1_68, %c0_69] : memref<1x1x2x128xf32, #tpu.memory_space<vmem>>, vector<1x1x1x128xf32>
    %67 = vector.shape_cast %66 : vector<1x1x1x128xf32> to vector<1x128xf32>
    %68 = vector.shape_cast %65 : vector<1x128xf32> to vector<1x1x1x128xf32>
    tpu.vector_store %arg8[%c0_66, %c0_67, %c1_68, %c0_69], %68 {strides = array<i32>} : memref<1x1x2x128xf32, #tpu.memory_space<vmem>>, vector<1x1x1x128xf32>,
    return
  }
  func.func @transform_0(%arg0: i32, %arg1: i32) -> (i32, i32, i32, i32) {
    %c0_i32 = arith.constant 0 : i32
    %0 = arith.addi %arg1, %c0_i32 : i32
    %c0_i32_0 = arith.constant 0 : i32
    %c0_i32_1 = arith.constant 0 : i32
    %c0_i32_2 = arith.constant 0 : i32
    return %arg0, %0, %c0_i32_0, %c0_i32_1 : i32, i32, i32, i32
  }
  func.func @transform_1(%arg0: i32, %arg1: i32) -> (i32, i32, i32, i32) {
    %c1_i32 = arith.constant 1 : i32
    %0 = arith.addi %arg1, %c1_i32 : i32
    %c0_i32 = arith.constant 0 : i32
    %c0_i32_0 = arith.constant 0 : i32
    %c0_i32_1 = arith.constant 0 : i32
    return %arg0, %0, %c0_i32, %c0_i32_0 : i32, i32, i32, i32
  }
  func.func @transform_2(%arg0: i32, %arg1: i32) -> (i32, i32, i32, i32) {
    %c2_i32 = arith.constant 2 : i32
    %0 = arith.addi %arg1, %c2_i32 : i32
    %c0_i32 = arith.constant 0 : i32
    %c0_i32_0 = arith.constant 0 : i32
    %c0_i32_1 = arith.constant 0 : i32
    return %arg0, %0, %c0_i32, %c0_i32_0 : i32, i32, i32, i32
  }
  func.func @transform_3(%arg0: i32, %arg1: i32) -> (i32, i32, i32, i32) {
    %c0_i32 = arith.constant 0 : i32
    %c0_i32_0 = arith.constant 0 : i32
    %c0_i32_1 = arith.constant 0 : i32
    %c0_i32_2 = arith.constant 0 : i32
    %c0_i32_3 = arith.constant 0 : i32
    return %c0_i32, %c0_i32_0, %c0_i32_1, %c0_i32_2 : i32, i32, i32, i32
  }
  func.func @transform_4(%arg0: i32, %arg1: i32) -> (i32, i32) {
    %c0_i32 = arith.constant 0 : i32
    %c0_i32_0 = arith.constant 0 : i32
    %c0_i32_1 = arith.constant 0 : i32
    return %c0_i32, %c0_i32_0 : i32, i32
  }
  func.func @transform_5(%arg0: i32, %arg1: i32) -> (i32, i32, i32, i32) {
    %c0_i32 = arith.constant 0 : i32
    %c0_i32_0 = arith.constant 0 : i32
    %c0_i32_1 = arith.constant 0 : i32
    return %arg0, %arg1, %c0_i32, %c0_i32_0 : i32, i32, i32, i32
  }
  func.func @transform_6(%arg0: i32, %arg1: i32) -> (i32, i32, i32, i32) {
    %c0_i32 = arith.constant 0 : i32
    %c0_i32_0 = arith.constant 0 : i32
    %c0_i32_1 = arith.constant 0 : i32
    return %arg0, %arg1, %c0_i32, %c0_i32_0 : i32, i32, i32, i32
  }
}

</mosaic_0001>

<bundles_post_ra>
// kernel: vanilla_unet_down_layer.5
= control target key start
LH: loop header
LB: loop body
LE: loop exit
PB: predicated region body
PF: predicated region fallthrough
CT: control target
= control target key end

     0   :  { %s423_s6 = smov 0   ;;  %s425_s7 = smov 0   ;;  %s468_s0 = inlined_call_operand.vmem [shape: f32[2,8,2,8,8], index: 0, kind: input, shape index: {}]   ;;  %s469_s1 = inlined_call_operand.vmem [shape: bf16[2,8,8,4], index: 1, kind: output, shape index: {}]  }
   0x1   :  { %s427_s8 = smov 0  }
   0x2 LB: > { %s23_s9 = sadd.s32 1, %s406_s7  ;;  %p334_p0 = scmp.ge.s32.totalorder %s410_s8, 1  ;;  %s410_s8 = sphi %s427_s8, %s11_s8   ;;  %s406_s7 = sphi %s425_s7, %s471_s7   ;;  %s402_s6 = sphi %s423_s6, %s470_s6  }
   0x3   : > { %p25_p1 = scmp.ge.s32.totalorder %s23_s9, 2  ;;  %p109_p2 = scmp.lt.s32.totalorder %s410_s8, 3 }
   0x5   : > { %s473_s9 = smov (%p25_p1, %s23_s9), 0  ;;  %p110_p3 = pnand %p334_p0, %p109_p2 }
   0x6   : > { %p139_p4 = scmp.lt.s32.totalorder (!%p110_p3), %s402_s6, 1  ;;  %s412_s14 = smov (!%p110_p3), 124   ;;  %vm231_vm0 = vcmask (!%p110_p3), 27648  }
   0x7   : > { %113 = sbr.rel (%p110_p3) target bundleno = 150 (0x96), region = 24 }
   0xe   : > { %s475_s6 = smov (!%p139_p4, %s402_s6), 1 }
   0xf   : > { %s341_s10 = sshll.u32 %s475_s6, 7  ;;  %s342_s15 = sshll.u32 %s475_s6, 5 }
  0x10   : > { %s147_s13 = scalar_lea.vmem %s468_s0, %s341_s10  ;;  %s157_s18 = scalar_lea.vmem %s469_s1, %s342_s15 }
  0x11   : > { %v167_v0 = vld [vmem:[%s147_s13 + $0x40] sm:$0xff]  ;;  %v168_v1 = vld [vmem:[%s147_s13 + $0x48] sm:$0xff]  ;;  %v169_v2 = vld [vmem:[%s147_s13 + $0x50] sm:$0xff] }
  0x12   : > { %v170_v3 = vld [vmem:[%s147_s13 + $0x58] sm:$0xff]  ;;  %v179_v4 = vmax.f32 %v167_v0, %v168_v1  ;;  %v159_v5 = vld [vmem:[%s147_s13] sm:$0xff]  ;;  %v160_v6 = vld [vmem:[%s147_s13 + $0x8] sm:$0xff] }
  0x13   : > { %v180_v7 = vmax.f32 %v169_v2, %v170_v3  ;;  %v161_v8 = vld [vmem:[%s147_s13 + $0x10] sm:$0xff]  ;;  %v162_v9 = vld [vmem:[%s147_s13 + $0x18] sm:$0xff]  ;;  %v175_v10 = vmax.f32 %v159_v5, %v160_v6  ;;  %v171_v11 = vld [vmem:[%s147_s13 + $0x60] sm:$0xff] }
  0x14   : > { %v176_v12 = vmax.f32 %v161_v8, %v162_v9  ;;  %v172_v13 = vld [vmem:[%s147_s13 + $0x68] sm:$0xff]  ;;  %v173_v14 = vld [vmem:[%s147_s13 + $0x70] sm:$0xff]  ;;  %v174_v15 = vld [vmem:[%s147_s13 + $0x78] sm:$0xff] }
  0x15   : > { %v378_v16 = vpack.i.bf16 %v180_v7, %v179_v4  ;;  %v181_v17 = vmax.f32 %v171_v11, %v172_v13  ;;  %v182_v18 = vmax.f32 %v173_v14, %v174_v15  ;;  %v163_v19 = vld [vmem:[%s147_s13 + $0x20] sm:$0xff]  ;;  %v164_v20 = vld [vmem:[%s147_s13 + $0x28] sm:$0xff]  ;;  %v165_v21 = vld [vmem:[%s147_s13 + $0x30] sm:$0xff] }
  0x16   : > { %v368_v22 = vpack.i.bf16 %v176_v12, %v175_v10  ;;  %v166_v23 = vld [vmem:[%s147_s13 + $0x38] sm:$0xff]  ;;  %v177_v24 = vmax.f32 %v163_v19, %v164_v20 }
  0x17   : > { %379 = vrot.lane.b32.xlu1 %v378_v16, %s412_s14  ;;  %v383_v25 = vpack.i.bf16 %v182_v18, %v181_v17  ;;  %v178_v26 = vmax.f32 %v165_v21, %v166_v23 }
  0x18   : > { %369 = vrot.lane.b32.xlu0 %v368_v22, %s412_s14 }
  0x19   : > { %v373_v27 = vpack.i.bf16 %v178_v26, %v177_v24 }
  0x1b   : > { %384 = vrot.lane.b32.xlu1 %v383_v25, %s412_s14 }
  0x1c   : > { %374 = vrot.lane.b32.xlu0 %v373_v27, %s412_s14 }
  0x89   : > { %v380_v28 = vpop.permute.xlu1 %379 }
  0x8a   : > { %v382_v29 = vunpack.i.h.bf16 %v380_v28  ;;  %v381_v30 = vunpack.i.l.bf16 %v380_v28  ;;  %v370_v31 = vpop.permute.xlu0 %369 }
  0x8b   : > { %v372_v32 = vunpack.i.h.bf16 %v370_v31  ;;  %v371_v33 = vunpack.i.l.bf16 %v370_v31 }
  0x8c   : > { %v220_v34 = vmax.f32 %v180_v7, %v382_v29  ;;  %v219_v35 = vmax.f32 %v179_v4, %v381_v30 }
  0x8d   : > { %v216_v36 = vmax.f32 %v176_v12, %v372_v32  ;;  %v215_v37 = vmax.f32 %v175_v10, %v371_v33  ;;  %v385_v38 = vpop.permute.xlu1 %384 }
  0x8e   : > { %v228_v39 = vpack.c.bf16 %v220_v34, %v220_v34  ;;  %v227_v40 = vpack.c.bf16 %v219_v35, %v219_v35  ;;  %v387_v41 = vunpack.i.h.bf16 %v385_v38  ;;  %v386_v42 = vunpack.i.l.bf16 %v385_v38  ;;  %v375_v43 = vpop.permute.xlu0 %374 }
  0x8f   : > { %v224_v44 = vpack.c.bf16 %v216_v36, %v216_v36  ;;  %v223_v45 = vpack.c.bf16 %v215_v37, %v215_v37  ;;  %v377_v46 = vunpack.i.h.bf16 %v375_v43  ;;  %v376_v47 = vunpack.i.l.bf16 %v375_v43 }
  0x90   : > { %237 = vst.msk [vmem:[%s157_s18 + $0x14] sm:$0xf] %vm231_vm0, %v228_v39  ;;  %236 = vst.msk [vmem:[%s157_s18 + $0x10] sm:$0xf] %vm231_vm0, %v227_v40  ;;  %v222_v48 = vmax.f32 %v182_v18, %v387_v41  ;;  %v221_v49 = vmax.f32 %v181_v17, %v386_v42 }
  0x91   : > { %233 = vst.msk [vmem:[%s157_s18 + $0x4] sm:$0xf] %vm231_vm0, %v224_v44  ;;  %232 = vst.msk [vmem:[%s157_s18] sm:$0xf] %vm231_vm0, %v223_v45  ;;  %v218_v50 = vmax.f32 %v178_v26, %v377_v46  ;;  %v217_v51 = vmax.f32 %v177_v24, %v376_v47 }
  0x92   : > { %v230_v52 = vpack.c.bf16 %v222_v48, %v222_v48  ;;  %v229_v53 = vpack.c.bf16 %v221_v49, %v221_v49 }
  0x93   : > { %v226_v54 = vpack.c.bf16 %v218_v50, %v218_v50  ;;  %v225_v55 = vpack.c.bf16 %v217_v51, %v217_v51 }
  0x94   : > { %239 = vst.msk [vmem:[%s157_s18 + $0x1c] sm:$0xf] %vm231_vm0, %v230_v52  ;;  %238 = vst.msk [vmem:[%s157_s18 + $0x18] sm:$0xf] %vm231_vm0, %v229_v53 }
  0x95   : > { %235 = vst.msk [vmem:[%s157_s18 + $0xc] sm:$0xf] %vm231_vm0, %v226_v54  ;;  %234 = vst.msk [vmem:[%s157_s18 + $0x8] sm:$0xf] %vm231_vm0, %v225_v55 }
  0x96 PF: > { %s11_s8 = sadd.s32 1, %s410_s8   ;;  %s470_s6 = smov %s406_s7 }
  0x97   : > { %p8_p5 = scmp.ge.s32.totalorder %s11_s8, 4   ;;  %s471_s7 = smov %s473_s9 }
  0x99   :  { %10 = sbr.rel (!%p8_p5) target bundleno = 2 (0x2), region = 54 }

// kernel: vanilla_unet_down_layer.7
= control target key start
LH: loop header
LB: loop body
LE: loop exit
PB: predicated region body
PF: predicated region fallthrough
CT: control target
= control target key end

     0   :  { %s421_s12 = smov 0   ;;  %s423_s13 = smov 0   ;;  %s472_s0 = inlined_call_operand.vmem [shape: f32[2,8,8,128], index: 0, kind: input, shape index: {}]   ;;  %s473_s1 = inlined_call_operand.vmem [shape: f32[1,128], index: 1, kind: input, shape index: {}]   ;;  %s474_s2 = inlined_call_operand.vmem [shape: f32[1,128], index: 2, kind: input, shape index: {}]   ;;  %s475_s3 = inlined_call_operand.vmem [shape: bf16[2,8,8,128], index: 3, kind: output, shape index: {}]  }
   0x1   :  { %s425_s14 = smov 0   ;;  %s427_s15 = smov 0  }
   0x2   :  { %s429_s16 = smov 0  }
   0x3 LB: > { %s22_s17 = sadd.s32 1, %s391_s14  ;;  %s25_s18 = sadd.s32 1, %s395_s15  ;;  %s399_s16 = sphi %s429_s16, %s13_s16   ;;  %s395_s15 = sphi %s427_s15, %s479_s15   ;;  %s391_s14 = sphi %s425_s14, %s478_s14   ;;  %s387_s13 = sphi %s423_s13, %s477_s13   ;;  %s383_s12 = sphi %s421_s12, %s476_s12  }
   0x4   : > { %p23_p0 = scmp.ge.s32.totalorder %s22_s17, 8  ;;  %p312_p1 = scmp.ge.s32.totalorder %s399_s16, 1 }
   0x5   : > { %p156_p2 = scmp.lt.s32.totalorder %s399_s16, 17 }
   0x6   : > { %s481_s17 = smov (%p23_p0, %s22_s17), 0  ;;  %s483_s18 = smov (!%p23_p0, %s25_s18), %s395_s15 }
   0x7   : > { %p157_p3 = pnand %p312_p1, %p156_p2  ;;  %p27_p4 = scmp.ge.s32.totalorder %s483_s18, 2 }
   0x8   : > { %p186_p5 = scmp.lt.s32.totalorder (!%p157_p3), %s387_s13, 1  ;;  %p188_p6 = scmp.lt.s32.totalorder (!%p157_p3), %s383_s12, 7  ;;  %v317_v0 = vld [vmem:[%s473_s1] ss:$0 sm:$0xff] (!%p157_p3) }
   0x9   : > { %s485_s18 = smov (%p27_p4, %s483_s18), 0  ;;  %160 = sbr.rel (%p157_p3) target bundleno = 31 (0x1f), region = 32 }
   0xa   : > { %v318_v2 = vld [vmem:[%s474_s2] ss:$0 sm:$0xff] (!%p157_p3) }
  0x10   : > { %s487_s13 = smov (!%p186_p5, %s387_s13), 1  ;;  %s489_s12 = smov (!%p188_p6, %s383_s12), 7 }
  0x11   : > { %s313_s19 = sshll.u32 %s487_s13, 3 }
  0x12   : > { %s191_s20 = sadd.s32 %s313_s19, %s489_s12 }
  0x13   : > { %s314_s21 = sshll.u32 %s191_s20, 3  ;;  %s316_s29 = sshll.u32 %s191_s20, 2 }
  0x14   : > { %s193_s26 = scalar_lea.vmem %s472_s0, %s314_s21  ;;  %s201_s5 = scalar_lea.vmem %s475_s3, %s316_s29 }
  0x15   : > { %v202_v1 = vld [vmem:[%s193_s26] sm:$0xff] }
  0x16   : > { %v210_v3 = vmul.f32 %v317_v0, %v202_v1 }
  0x18   : > { %v218_v4 = vadd.f32 %v318_v2, %v210_v3 }
  0x1a   : > { %v219_v5 = vmax.f32 %v218_v4, 0.0 }
  0x1c   : > { %v220_v6 = vpack.c.bf16 %v219_v5, %v219_v5 }
  0x1e   : > { %221 = vst [vmem:[%s201_s5] sm:$0xf] %v220_v6 }
  0x1f PF: > { %s13_s16 = sadd.s32 1, %s399_s16   ;;  %s476_s12 = smov %s391_s14 }
  0x20   : > { %p10_p7 = scmp.ge.s32.totalorder %s13_s16, 18   ;;  %s477_s13 = smov %s395_s15 }
  0x21   : > { %s478_s14 = smov %s481_s17  ;;  %s479_s15 = smov %s485_s18 }
  0x22   :  { %12 = sbr.rel (!%p10_p7) target bundleno = 3 (0x3), region = 62 }

// kernel: vanilla_unet_down_layer.6
= control target key start
LH: loop header
LB: loop body
LE: loop exit
PB: predicated region body
PF: predicated region fallthrough
CT: control target
= control target key end

     0   :  { %s1310_s21 = smov 0   ;;  %s1312_s22 = smov 0   ;;  %s1461_s0 = inlined_call_operand.vmem [shape: bf16[2,10,10,4], index: 0, kind: input, shape index: {}, may-alias: {0,1,2}]   ;;  %s1462_s1 = inlined_call_operand.vmem [shape: bf16[2,10,10,4], index: 1, kind: input, shape index: {}, may-alias: {0,1,2}]   ;;  %s1463_s2 = inlined_call_operand.vmem [shape: bf16[2,10,10,4], index: 2, kind: input, shape index: {}, may-alias: {0,1,2}]   ;;  %s1464_s3 = inlined_call_operand.vmem [shape: bf16[3,3,4,128], index: 3, kind: input, shape index: {}]   ;;  %s1465_s4 = inlined_call_operand.vmem [shape: f32[1,128], index: 4, kind: input, shape index: {}]   ;;  %s1466_s5 = inlined_call_operand.vmem [shape: f32[2,8,8,128], index: 5, kind: output, shape index: {0}]   ;;  %s1467_s6 = inlined_call_operand.vmem [shape: f32[2,8,2,128], index: 6, kind: output, shape index: {1}]  }
   0x1   :  { %s1314_s23 = smov 0   ;;  %s1316_s24 = smov 0  }
   0x2   :  { %s1318_s25 = smov 0  }
   0x3 LB: > { %s26_s26 = sadd.s32 1, %s1263_s23  ;;  %s29_s27 = sadd.s32 1, %s1267_s24  ;;  %s1271_s25 = sphi %s1318_s25, %s17_s25   ;;  %s1267_s24 = sphi %s1316_s24, %s1471_s24   ;;  %s1263_s23 = sphi %s1314_s23, %s1470_s23   ;;  %s1259_s22 = sphi %s1312_s22, %s1469_s22   ;;  %s1255_s21 = sphi %s1310_s21, %s1468_s21  }
   0x4   : > { %p27_p0 = scmp.ge.s32.totalorder %s26_s26, 8  ;;  %p1081_p1 = scmp.ge.s32.totalorder %s1271_s25, 1 }
   0x5   : > { %p277_p2 = scmp.lt.s32.totalorder %s1271_s25, 17 }
   0x6   : > { %s1473_s26 = smov (%p27_p0, %s26_s26), 0  ;;  %s1475_s27 = smov (!%p27_p0, %s29_s27), %s1267_s24 }
   0x7   : > { %p278_p3 = pnand %p1081_p1, %p277_p2  ;;  %p31_p4 = scmp.ge.s32.totalorder %s1475_s27, 2 }
   0x8   : > { %v1092_v0 = vld [vmem:[%s1464_s3 + $0x2] sm:$0x3] (!%p278_p3)  ;;  %vm415_vm0 = vcmask (!%p278_p3), 1041408   ;;  %v396_v1 = vld [vmem:[%s1464_s3] sm:$0x3] (!%p278_p3)  ;;  %v1273_v2 = vmov (!%p278_p3), 0.0  }
   0x9   : > { %s1477_s27 = smov (%p31_p4, %s1475_s27), 0  ;;  %281 = sbr.rel (%p278_p3) target bundleno = 295 (0x127), region = 40 }
   0xa   : > { %1133 = vmatprep.subr.bf16.mxu0 (!%p278_p3), %v1273_v2  ;;  %v417_v3 = vsel (!%p278_p3), %vm415_vm0, %v1092_v0, 0  ;;  %1139 = vmatprep.subr.bf16.mxu1 (!%p278_p3), %v1273_v2  ;;  %v463_v4 = vsel (!%p278_p3), %vm415_vm0, %v396_v1, 0  ;;  %p342_p5 = scmp.lt.s32.totalorder (!%p278_p3), %s1259_s22, 1  ;;  %p344_p6 = scmp.lt.s32.totalorder (!%p278_p3), %s1255_s21, 9  ;;  %vm1274_vm1 = vmmov (!%p278_p3), 0   ;;  %vm411_vm2 = vcmask (!%p278_p3), 31744  }
   0xb   : > { %1134 = vmatpush3.bf16.msra.mxu0 (!%p278_p3), %v417_v3  ;;  %1140 = vmatpush3.bf16.msra.mxu1 (!%p278_p3), %v463_v4  ;;  %s351_s10 = sadd.s32 (!%p278_p3), 1, %s1255_s21  ;;  %v1098_v5 = vld [vmem:[%s1464_s3 + $0x6] sm:$0x3] (!%p278_p3)  ;;  %s362_s15 = sadd.s32 (!%p278_p3), 2, %s1255_s21  ;;  %v1096_v12 = vld [vmem:[%s1464_s3 + $0x4] sm:$0x3] (!%p278_p3) }
   0xc   : > { %1135 = vmatprep.mubr.msk.bf16.mxu0 (!%p278_p3), %vm1274_vm1, %v1273_v2  ;;  %1141 = vmatprep.mubr.msk.bf16.mxu1 (!%p278_p3), %vm1274_vm1, %v1273_v2  ;;  %p354_p7 = scmp.lt.s32.totalorder (!%p278_p3), %s351_s10, 9  ;;  %p365_p8 = scmp.lt.s32.totalorder (!%p278_p3), %s362_s15, 9  ;;  %v561_v6 = vsel (!%p278_p3), %vm415_vm0, %v1098_v5, 0  ;;  %v1103_v14 = vld [vmem:[%s1464_s3 + $0xa] sm:$0x3] (!%p278_p3)  ;;  %v512_v18 = vsel (!%p278_p3), %vm415_vm0, %v1096_v12, 0 }
   0xd   : > { %1145 = vmatprep.subr.bf16.mxu0 (!%p278_p3), %v1273_v2  ;;  %1151 = vmatprep.subr.bf16.mxu1 (!%p278_p3), %v1273_v2  ;;  %v672_v21 = vsel (!%p278_p3), %vm415_vm0, %v1103_v14, 0  ;;  %v1100_v24 = vld [vmem:[%s1464_s3 + $0x8] sm:$0x3] (!%p278_p3)  ;;  %v1107_v28 = vld [vmem:[%s1464_s3 + $0xe] sm:$0x3] (!%p278_p3)  ;;  %p375_p9 = scmp.lt.s32.totalorder (!%p278_p3), %s1255_s21, 7 }
   0xe   : > { %v622_v30 = vsel (!%p278_p3), %vm415_vm0, %v1100_v24, 0  ;;  %v782_v31 = vsel (!%p278_p3), %vm415_vm0, %v1107_v28, 0  ;;  %v1105_v36 = vld [vmem:[%s1464_s3 + $0xc] sm:$0x3] (!%p278_p3)  ;;  %v1110_v40 = vld [vmem:[%s1464_s3 + $0x10] sm:$0x3] (!%p278_p3) }
   0xf   : > { %v721_v39 = vsel (!%p278_p3), %vm415_vm0, %v1105_v36, 0  ;;  %v832_v41 = vsel (!%p278_p3), %vm415_vm0, %v1110_v40, 0 }
  0x10   : > { %s1479_s22 = smov (!%p342_p5, %s1259_s22), 1  ;;  %s1481_s10 = smov (!%p354_p7, %s351_s10), 9 }
  0x11   : > { %s345_s8 = scalar_select %p344_p6, %s1255_s21, 9 }
  0x12   : > { %s1187_s9 = smul.u32 20, %s1479_s22  ;;  %s1483_s15 = smov (!%p365_p8, %s362_s15), 9 }
  0x13   : > { %s1082_s11 = sshll.u32 %s345_s8, 1  ;;  %s1084_s20 = sshll.u32 %s1481_s10, 1 }
  0x14   : > { %s348_s14 = sadd.s32 %s1187_s9, %s1082_s11  ;;  %s358_s28 = sadd.s32 %s1187_s9, %s1084_s20 }
  0x15   : > { %s1083_s16 = sshll.u32 %s348_s14, 2  ;;  %s1086_s29 = sshll.u32 %s1483_s15, 1 }
  0x16   : > { %s350_s19 = scalar_lea.vmem %s1461_s0, %s1083_s16  ;;  %s1085_s8 = sshll.u32 %s358_s28, 2 }
  0x17   : > { %v390_v7 = vld [vmem:[%s350_s19] sm:$0xf]  ;;  %v391_v8 = vld [vmem:[%s350_s19 + $0x4] sm:$0x1]  ;;  %s369_s11 = sadd.s32 %s1187_s9, %s1086_s29  ;;  %s360_s14 = scalar_lea.vmem %s1462_s1, %s1085_s8 }
  0x18   : > { %v1093_v9 = vcombine.low %v390_v7, %v391_v8  ;;  %1142 = vmatmul.mubr.msk.bf16.vlgmr.msra.gmra.mrb[0].mxu1 %vm411_vm2, %v390_v7  ;;  %s1087_s10 = sshll.u32 %s369_s11, 2  ;;  %v392_v15 = vld [vmem:[%s360_s14] sm:$0xf]  ;;  %v393_v16 = vld [vmem:[%s360_s14 + $0x4] sm:$0x1]  ;;  %s1485_s21 = smov (!%p375_p9, %s1255_s21), 7 }
  0x19   : > { %1152 = vmatpush3.bf16.msra.mxu1 %v561_v6  ;;  %1153 = vmatprep.mubr.msk.bf16.mxu1 %vm1274_vm1, %v1273_v2  ;;  %s371_s19 = scalar_lea.vmem %s1463_s2, %s1087_s10  ;;  %v1101_v22 = vcombine.low %v392_v15, %v393_v16  ;;  %s1088_s12 = sshll.u32 %s1479_s22, 3 }
  0x1a   : > { %v405_v10 = vshrl.u32 %v1093_v9, 16  ;;  %v407_v11 = vshll.u32 %v1093_v9, 16  ;;  %1163 = vmatprep.subr.bf16.mxu1 %v1273_v2  ;;  %v394_v19 = vld [vmem:[%s371_s19] sm:$0xf]  ;;  %v395_v20 = vld [vmem:[%s371_s19 + $0x4] sm:$0x1]  ;;  %s378_s13 = sadd.s32 %s1088_s12, %s1485_s21 }
  0x1b   : > { %v1108_v23 = vcombine.low %v394_v19, %v395_v20  ;;  %v507_v25 = vrot.slane %v1093_v9, 1  ;;  %v614_v26 = vshll.u32 %v1101_v22, 16  ;;  %v667_v27 = vrot.slane %v1101_v22, 1  ;;  %s1089_s14 = sshll.u32 %s378_s13, 3  ;;  %s1091_s21 = sshll.u32 %s378_s13, 1 }
  0x1c   : > { %v409_v13 = vrot.slane %v407_v11, 1  ;;  %v612_v32 = vshrl.u32 %v1101_v22, 16  ;;  %s380_s15 = scalar_lea.vmem %s1466_s5, %s1089_s14  ;;  %s388_s9 = scalar_lea.vmem %s1467_s6, %s1091_s21 }
  0x1d   : > { %v774_v29 = vshll.u32 %v1108_v23, 16  ;;  %v616_v33 = vrot.slane %v614_v26, 1  ;;  %v772_v34 = vshrl.u32 %v1108_v23, 16  ;;  %v827_v42 = vrot.slane %v1108_v23, 1 }
  0x1e   : > { %v410_v17 = vor.u32 %v409_v13, %v405_v10 }
  0x1f   : > { %v776_v35 = vrot.slane %v774_v29, 1  ;;  %v617_v37 = vor.u32 %v616_v33, %v612_v32 }
  0x20   : > { %1136 = vmatmul.mubr.msk.bf16.vlgmr.msra.gmra.mrb[0].mxu0 %vm411_vm2, %v410_v17  ;;  %1154 = vmatmul.mubr.msk.bf16.vlgmr.msra.gmra.mrb[4].mxu1 %vm411_vm2, %v392_v15 }
  0x21   : > { %1146 = vmatpush3.bf16.msra.mxu0 %v512_v18  ;;  %1147 = vmatprep.mubr.msk.bf16.mxu0 %vm1274_vm1, %v1273_v2  ;;  %v777_v38 = vor.u32 %v776_v35, %v772_v34 }
  0x22   : > { %1157 = vmatprep.subr.bf16.mxu0 %v1273_v2  ;;  %1164 = vmatpush3.bf16.msra.mxu1 %v672_v21 }
  0x23   : > { %1165 = vmatprep.mubr.msk.bf16.mxu1 %vm1274_vm1, %v1273_v2  ;;  %1175 = vmatprep.subr.bf16.mxu1 %v1273_v2 }
  0x28   : > { %1148 = vmatmul.mubr.msk.bf16.vlgmr.msra.gmra.mrb[4].mxu0 %vm411_vm2, %v507_v25  ;;  %1166 = vmatmul.mubr.msk.bf16.vlgmr.msra.gmra.mrb[8].mxu1 %vm411_vm2, %v667_v27 }
  0x29   : > { %1158 = vmatpush3.bf16.msra.mxu0 %v622_v30  ;;  %1159 = vmatprep.mubr.msk.bf16.mxu0 %vm1274_vm1, %v1273_v2 }
  0x2a   : > { %1169 = vmatprep.subr.bf16.mxu0 %v1273_v2  ;;  %1176 = vmatpush3.bf16.msra.mxu1 %v782_v31 }
  0x2b   : > { %1177 = vmatprep.mubr.msk.bf16.mxu1 %vm1274_vm1, %v1273_v2 }
  0x30   : > { %1160 = vmatmul.mubr.msk.bf16.vlgmr.msra.gmra.mrb[8].mxu0 %vm411_vm2, %v617_v37  ;;  %1178 = vmatmul.mubr.msk.bf16.vlgmr.msra.gmra.mrb[12].mxu1 %vm411_vm2, %v777_v38 }
  0x31   : > { %1170 = vmatpush3.bf16.msra.mxu0 %v721_v39  ;;  %1171 = vmatprep.mubr.msk.bf16.mxu0 %vm1274_vm1, %v1273_v2 }
  0x32   : > { %1181 = vmatprep.subr.bf16.mxu0 %v1273_v2 }
  0x38   : > { %1172 = vmatmul.mubr.msk.bf16.vlgmr.msra.gmra.mrb[12].mxu0 %vm411_vm2, %v394_v19  ;;  %v1112_v19 = vld [vmem:[%s1465_s4] ss:$0 sm:$0xff] }
  0x39   : > { %1182 = vmatpush3.bf16.msra.mxu0 %v832_v41  ;;  %1183 = vmatprep.mubr.msk.bf16.mxu0 %vm1274_vm1, %v1273_v2 }
  0x40   : > { %1184 = vmatmul.mubr.msk.bf16.vlgmr.msra.gmra.mrb[16].mxu0 %vm411_vm2, %v827_v42 }
  0xeb   : > { %v499_v43 = vpop.f32.mrb[0].mxu1 }
  0xec   : > { %v1143_v44 = vpop.f32.mrb[1].mxu1 }
  0xed   : > { %v502_v45 = vpop.f32.mrb[2].mxu1 }
  0xee   : > { %v1144_v46 = vpop.f32.mrb[3].mxu1 }
  0xf3   : > { %v453_v47 = vpop.f32.mrb[0].mxu0  ;;  %v597_v48 = vpop.f32.mrb[4].mxu1 }
  0xf4   : > { %v500_v49 = vadd.f32 %v499_v43, %v453_v47  ;;  %v1137_v50 = vpop.f32.mrb[1].mxu0  ;;  %v1155_v51 = vpop.f32.mrb[5].mxu1 }
  0xf5   : > { %v456_v52 = vpop.f32.mrb[2].mxu0  ;;  %v600_v53 = vpop.f32.mrb[6].mxu1 }
  0xf6   : > { %v1138_v54 = vpop.f32.mrb[3].mxu0  ;;  %v1156_v55 = vpop.f32.mrb[7].mxu1 }
  0xfb   : > { %v548_v56 = vpop.f32.mrb[4].mxu0  ;;  %v708_v57 = vpop.f32.mrb[8].mxu1 }
  0xfc   : > { %v554_v58 = vadd.f32 %v548_v56, %v500_v49  ;;  %v1149_v59 = vpop.f32.mrb[5].mxu0  ;;  %v1167_v60 = vpop.f32.mrb[9].mxu1 }
  0xfd   : > { %v551_v61 = vpop.f32.mrb[6].mxu0  ;;  %v711_v62 = vpop.f32.mrb[10].mxu1 }
  0xfe   : > { %v603_v63 = vadd.f32 %v597_v48, %v554_v58  ;;  %v1150_v0 = vpop.f32.mrb[7].mxu0  ;;  %v1168_v1 = vpop.f32.mrb[11].mxu1 }
 0x103   : > { %v658_v2 = vpop.f32.mrb[8].mxu0  ;;  %v818_v3 = vpop.f32.mrb[12].mxu1 }
 0x104   : > { %v664_v4 = vadd.f32 %v658_v2, %v603_v63  ;;  %v1161_v5 = vpop.f32.mrb[9].mxu0  ;;  %v1179_v6 = vpop.f32.mrb[13].mxu1 }
 0x105   : > { %v661_v7 = vpop.f32.mrb[10].mxu0  ;;  %v821_v8 = vpop.f32.mrb[14].mxu1 }
 0x106   : > { %v714_v9 = vadd.f32 %v708_v57, %v664_v4  ;;  %v1162_v10 = vpop.f32.mrb[11].mxu0  ;;  %v1180_v11 = vpop.f32.mrb[15].mxu1 }
 0x10b   : > { %v757_v12 = vpop.f32.mrb[12].mxu0 }
 0x10c   : > { %v763_v13 = vadd.f32 %v757_v12, %v714_v9  ;;  %v1173_v14 = vpop.f32.mrb[13].mxu0 }
 0x10d   : > { %v760_v15 = vpop.f32.mrb[14].mxu0 }
 0x10e   : > { %v824_v16 = vadd.f32 %v818_v3, %v763_v13  ;;  %v1174_v17 = vpop.f32.mrb[15].mxu0 }
 0x113   : > { %v868_v18 = vpop.f32.mrb[16].mxu0 }
 0x114   : > { %v874_v20 = vadd.f32 %v868_v18, %v824_v16  ;;  %v1185_v21 = vpop.f32.mrb[17].mxu0 }
 0x115   : > { %v871_v22 = vpop.f32.mrb[18].mxu0 }
 0x116   : > { %v882_v23 = vadd.f32 %v1112_v19, %v874_v20  ;;  %v1186_v24 = vpop.f32.mrb[19].mxu0 }
 0x118   : > { %883 = vst [vmem:[%s380_s15] sm:$0xff] %v882_v23  ;;  %v884_v25 = vrot.slane %v882_v23, 4  ;;  %v891_v26 = vmul.f32 %v882_v23, %v882_v23 }
 0x11a   : > { %v885_v27 = vadd.f32 %v884_v25, %v882_v23  ;;  %v892_v28 = vrot.slane %v891_v26, 4 }
 0x11c   : > { %v886_v29 = vrot.slane %v885_v27, 2  ;;  %v893_v30 = vadd.f32 %v892_v28, %v891_v26 }
 0x11e   : > { %v887_v31 = vadd.f32 %v886_v29, %v885_v27  ;;  %v894_v32 = vrot.slane %v893_v30, 2 }
 0x120   : > { %v888_v33 = vrot.slane %v887_v31, 1  ;;  %v895_v34 = vadd.f32 %v894_v32, %v893_v30 }
 0x122   : > { %v889_v35 = vadd.f32 %v888_v33, %v887_v31  ;;  %v896_v36 = vrot.slane %v895_v34, 1 }
 0x124   : > { %890 = vst [vmem:[%s388_s9] sm:$0x1] %v889_v35  ;;  %v897_v37 = vadd.f32 %v896_v36, %v895_v34 }
 0x126   : > { %898 = vst [vmem:[%s388_s9 + $0x1] sm:$0x1] %v897_v37 }
 0x127 PF: > { %s17_s25 = sadd.s32 1, %s1271_s25   ;;  %s1468_s21 = smov %s1263_s23 }
 0x128   : > { %p14_p10 = scmp.ge.s32.totalorder %s17_s25, 18   ;;  %s1469_s22 = smov %s1267_s24 }
 0x129   : > { %s1470_s23 = smov %s1473_s26  ;;  %s1471_s24 = smov %s1477_s27 }
 0x12a   :  { %16 = sbr.rel (!%p14_p10) target bundleno = 3 (0x3), region = 96 }

// kernel: vanilla_unet_down_layer.9
= control target key start
LH: loop header
LB: loop body
LE: loop exit
PB: predicated region body
PF: predicated region fallthrough
CT: control target
= control target key end

     0   :  { %s420_s12 = smov 0   ;;  %s422_s13 = smov 0   ;;  %s471_s0 = inlined_call_operand.vmem [shape: f32[2,8,8,128], index: 0, kind: input, shape index: {}]   ;;  %s472_s1 = inlined_call_operand.vmem [shape: f32[1,128], index: 1, kind: input, shape index: {}]   ;;  %s473_s2 = inlined_call_operand.vmem [shape: f32[1,128], index: 2, kind: input, shape index: {}]   ;;  %s474_s3 = inlined_call_operand.vmem [shape: f32[2,8,8,128], index: 3, kind: output, shape index: {}]  }
   0x1   :  { %s424_s14 = smov 0   ;;  %s426_s15 = smov 0  }
   0x2   :  { %s428_s16 = smov 0  }
   0x3 LB: > { %s22_s17 = sadd.s32 1, %s390_s14  ;;  %s25_s18 = sadd.s32 1, %s394_s15  ;;  %s398_s16 = sphi %s428_s16, %s13_s16   ;;  %s394_s15 = sphi %s426_s15, %s478_s15   ;;  %s390_s14 = sphi %s424_s14, %s477_s14   ;;  %s386_s13 = sphi %s422_s13, %s476_s13   ;;  %s382_s12 = sphi %s420_s12, %s475_s12  }
   0x4   : > { %p23_p0 = scmp.ge.s32.totalorder %s22_s17, 8  ;;  %p311_p1 = scmp.ge.s32.totalorder %s398_s16, 1 }
   0x5   : > { %p156_p2 = scmp.lt.s32.totalorder %s398_s16, 17 }
   0x6   : > { %s480_s17 = smov (%p23_p0, %s22_s17), 0  ;;  %s482_s18 = smov (!%p23_p0, %s25_s18), %s394_s15 }
   0x7   : > { %p157_p3 = pnand %p311_p1, %p156_p2  ;;  %p27_p4 = scmp.ge.s32.totalorder %s482_s18, 2 }
   0x8   : > { %p186_p5 = scmp.lt.s32.totalorder (!%p157_p3), %s386_s13, 1  ;;  %p188_p6 = scmp.lt.s32.totalorder (!%p157_p3), %s382_s12, 7  ;;  %v316_v0 = vld [vmem:[%s472_s1] ss:$0 sm:$0xff] (!%p157_p3) }
   0x9   : > { %s484_s18 = smov (%p27_p4, %s482_s18), 0  ;;  %160 = sbr.rel (%p157_p3) target bundleno = 29 (0x1d), region = 32 }
   0xa   : > { %v317_v2 = vld [vmem:[%s473_s2] ss:$0 sm:$0xff] (!%p157_p3) }
  0x10   : > { %s486_s13 = smov (!%p186_p5, %s386_s13), 1  ;;  %s488_s12 = smov (!%p188_p6, %s382_s12), 7 }
  0x11   : > { %s312_s19 = sshll.u32 %s486_s13, 3 }
  0x12   : > { %s191_s20 = sadd.s32 %s312_s19, %s488_s12 }
  0x13   : > { %s313_s21 = sshll.u32 %s191_s20, 3 }
  0x14   : > { %s193_s26 = scalar_lea.vmem %s471_s0, %s313_s21  ;;  %s201_s4 = scalar_lea.vmem %s474_s3, %s313_s21 }
  0x15   : > { %v202_v1 = vld [vmem:[%s193_s26] sm:$0xff] }
  0x16   : > { %v210_v3 = vmul.f32 %v316_v0, %v202_v1 }
  0x18   : > { %v218_v4 = vadd.f32 %v317_v2, %v210_v3 }
  0x1a   : > { %v219_v5 = vmax.f32 %v218_v4, 0.0 }
  0x1c   : > { %220 = vst [vmem:[%s201_s4] sm:$0xff] %v219_v5 }
  0x1d PF: > { %s13_s16 = sadd.s32 1, %s398_s16   ;;  %s475_s12 = smov %s390_s14 }
  0x1e   : > { %p10_p7 = scmp.ge.s32.totalorder %s13_s16, 18   ;;  %s476_s13 = smov %s394_s15 }
  0x1f   : > { %s477_s14 = smov %s480_s17  ;;  %s478_s15 = smov %s484_s18 }
  0x20   :  { %12 = sbr.rel (!%p10_p7) target bundleno = 3 (0x3), region = 62 }

// kernel: vanilla_unet_down_layer.8
= control target key start
LH: loop header
LB: loop body
LE: loop exit
PB: predicated region body
PF: predicated region fallthrough
CT: control target
= control target key end

     0   :  { %s2271_s21 = smov 0   ;;  %s2273_s22 = smov 0   ;;  %s2670_s0 = inlined_call_operand.vmem [shape: bf16[2,10,10,128], index: 0, kind: input, shape index: {}, may-alias: {0,1,2}]   ;;  %s2671_s1 = inlined_call_operand.vmem [shape: bf16[2,10,10,128], index: 1, kind: input, shape index: {}, may-alias: {0,1,2}]   ;;  %s2672_s2 = inlined_call_operand.vmem [shape: bf16[2,10,10,128], index: 2, kind: input, shape index: {}, may-alias: {0,1,2}]   ;;  %s2673_s3 = inlined_call_operand.vmem [shape: bf16[3,3,128,128], index: 3, kind: input, shape index: {}]   ;;  %s2674_s4 = inlined_call_operand.vmem [shape: f32[1,128], index: 4, kind: input, shape index: {}]   ;;  %s2675_s5 = inlined_call_operand.vmem [shape: f32[2,8,8,128], index: 5, kind: output, shape index: {0}]   ;;  %s2676_s6 = inlined_call_operand.vmem [shape: f32[2,8,2,128], index: 6, kind: output, shape index: {1}]  }
   0x1   :  { %s2275_s23 = smov 0   ;;  %s2277_s24 = smov 0  }
   0x2   :  { %s2279_s25 = smov 0  }
   0x3 LB: > { %s26_s26 = sadd.s32 1, %s2224_s23  ;;  %s29_s27 = sadd.s32 1, %s2228_s24  ;;  %s2232_s25 = sphi %s2279_s25, %s17_s25   ;;  %s2228_s24 = sphi %s2277_s24, %s2680_s24   ;;  %s2224_s23 = sphi %s2275_s23, %s2679_s23   ;;  %s2220_s22 = sphi %s2273_s22, %s2678_s22   ;;  %s2216_s21 = sphi %s2271_s21, %s2677_s21  }
   0x4   : > { %p27_p0 = scmp.ge.s32.totalorder %s26_s26, 8  ;;  %p1598_p1 = scmp.ge.s32.totalorder %s2232_s25, 1 }
   0x5   : > { %p277_p2 = scmp.lt.s32.totalorder %s2232_s25, 17 }
   0x6   : > { %s2682_s26 = smov (%p27_p0, %s26_s26), 0  ;;  %s2684_s27 = smov (!%p27_p0, %s29_s27), %s2228_s24 }
   0x7   : > { %p278_p3 = pnand %p1598_p1, %p277_p2  ;;  %p31_p4 = scmp.ge.s32.totalorder %s2684_s27, 2 }
   0x8   : > { %v2119_v0 = vld [vmem:[%s2673_s3 + $0x40] sm:$0xff] (!%p278_p3)   ;;  %v2234_v1 = vmov (!%p278_p3), 0.0   ;;  %v2121_v3 = vld [vmem:[%s2673_s3 + $0x48] sm:$0xff] (!%p278_p3)   ;;  %vm2235_vm0 = vmmov (!%p278_p3), 0   ;;  %p342_p5 = scmp.lt.s32.totalorder (!%p278_p3), %s2220_s22, 1  ;;  %p344_p6 = scmp.lt.s32.totalorder (!%p278_p3), %s2216_s21, 9 }
   0x9   : > { %s2686_s27 = smov (%p31_p4, %s2684_s27), 0  ;;  %281 = sbr.rel (%p278_p3) target bundleno = 401 (0x191), region = 40 }
   0xa   : > { %1896 = vmatprep.subr.bf16.mxu0 (!%p278_p3), %v2234_v1  ;;  %1916 = vmatprep.subr.bf16.mxu1 (!%p278_p3), %v2234_v1  ;;  %v2120_v2 = vld [vmem:[%s2673_s3] sm:$0xff] (!%p278_p3)   ;;  %v2122_v4 = vld [vmem:[%s2673_s3 + $0x8] sm:$0xff] (!%p278_p3)   ;;  %v2123_v5 = vld [vmem:[%s2673_s3 + $0x50] sm:$0xff] (!%p278_p3)   ;;  %s351_s7 = sadd.s32 (!%p278_p3), 1, %s2216_s21  ;;  %s362_s14 = sadd.s32 (!%p278_p3), 2, %s2216_s21 }
   0xb   : > { %1897 = vmatpush3.bf16.msra.mxu0 (!%p278_p3), %v2119_v0  ;;  %1912 = vmatprep.mubr.msk.bf16.mxu0 (!%p278_p3), %vm2235_vm0, %v2234_v1  ;;  %v2124_v6 = vld [vmem:[%s2673_s3 + $0x10] sm:$0xff] (!%p278_p3)   ;;  %v2125_v7 = vld [vmem:[%s2673_s3 + $0x58] sm:$0xff] (!%p278_p3)   ;;  %v2127_v9 = vld [vmem:[%s2673_s3 + $0x60] sm:$0xff] (!%p278_p3)   ;;  %p354_p7 = scmp.lt.s32.totalorder (!%p278_p3), %s351_s7, 9  ;;  %p365_p8 = scmp.lt.s32.totalorder (!%p278_p3), %s362_s14, 9 }
   0xc   : > { %1917 = vmatpush3.bf16.msra.mxu1 (!%p278_p3), %v2120_v2  ;;  %1898 = vmatprep.subr.bf16.mxu0 (!%p278_p3), %v2234_v1  ;;  %v2126_v8 = vld [vmem:[%s2673_s3 + $0x18] sm:$0xff] (!%p278_p3)   ;;  %v2128_v10 = vld [vmem:[%s2673_s3 + $0x20] sm:$0xff] (!%p278_p3)   ;;  %v2129_v14 = vld [vmem:[%s2673_s3 + $0x68] sm:$0xff] (!%p278_p3)   ;;  %p375_p9 = scmp.lt.s32.totalorder (!%p278_p3), %s2216_s21, 7 }
   0xd   : > { %1918 = vmatprep.subr.bf16.mxu1 (!%p278_p3), %v2234_v1  ;;  %1932 = vmatprep.mubr.msk.bf16.mxu1 (!%p278_p3), %vm2235_vm0, %v2234_v1  ;;  %v2130_v15 = vld [vmem:[%s2673_s3 + $0x28] sm:$0xff] (!%p278_p3)   ;;  %v2131_v17 = vld [vmem:[%s2673_s3 + $0x70] sm:$0xff] (!%p278_p3)   ;;  %v2133_v21 = vld [vmem:[%s2673_s3 + $0x78] sm:$0xff] (!%p278_p3)  }
   0xe   : > { %v2132_v18 = vld [vmem:[%s2673_s3 + $0x30] sm:$0xff] (!%p278_p3)   ;;  %v2134_v22 = vld [vmem:[%s2673_s3 + $0x38] sm:$0xff] (!%p278_p3)   ;;  %v2136_v24 = vld [vmem:[%s2673_s3 + $0x80] sm:$0xff] (!%p278_p3)  }
   0xf   : > { %1899 = vmatpush3.bf16.msra.mxu0 (!%p278_p3), %v2121_v3  ;;  %v2137_v25 = vld [vmem:[%s2673_s3 + $0xc0] sm:$0xff] (!%p278_p3)   ;;  %v2138_v26 = vld [vmem:[%s2673_s3 + $0x88] sm:$0xff] (!%p278_p3)   ;;  %v2140_v28 = vld [vmem:[%s2673_s3 + $0x90] sm:$0xff] (!%p278_p3)  }
  0x10   : > { %s2688_s22 = smov (!%p342_p5, %s2220_s22), 1  ;;  %1919 = vmatpush3.bf16.msra.mxu1 %v2122_v4  ;;  %1900 = vmatprep.subr.bf16.mxu0 %v2234_v1  ;;  %v2139_v27 = vld [vmem:[%s2673_s3 + $0xc8] sm:$0xff]   ;;  %v2141_v29 = vld [vmem:[%s2673_s3 + $0xd0] sm:$0xff]   ;;  %v2142_v30 = vld [vmem:[%s2673_s3 + $0x98] sm:$0xff]   ;;  %s2690_s7 = smov (!%p354_p7, %s351_s7), 9 }
  0x11   : > { %s345_s12 = scalar_select %p344_p6, %s2216_s21, 9  ;;  %1920 = vmatprep.subr.bf16.mxu1 %v2234_v1  ;;  %v2143_v31 = vld [vmem:[%s2673_s3 + $0xd8] sm:$0xff]   ;;  %v2144_v32 = vld [vmem:[%s2673_s3 + $0xa0] sm:$0xff]   ;;  %v2146_v34 = vld [vmem:[%s2673_s3 + $0xa8] sm:$0xff]  }
  0x12   : > { %s2335_s15 = smul.u32 20, %s2688_s22  ;;  %v2145_v33 = vld [vmem:[%s2673_s3 + $0xe0] sm:$0xff]   ;;  %v2147_v35 = vld [vmem:[%s2673_s3 + $0xe8] sm:$0xff]   ;;  %v2148_v36 = vld [vmem:[%s2673_s3 + $0xb0] sm:$0xff]   ;;  %s2692_s14 = smov (!%p365_p8, %s362_s14), 9 }
  0x13   : > { %s1599_s18 = sshll.u32 %s345_s12, 1  ;;  %1901 = vmatpush3.bf16.msra.mxu0 %v2123_v5  ;;  %v2149_v37 = vld [vmem:[%s2673_s3 + $0xf0] sm:$0xff]   ;;  %v2150_v38 = vld [vmem:[%s2673_s3 + $0xb8] sm:$0xff]   ;;  %v2152_v41 = vld [vmem:[%s2673_s3 + $0x100] sm:$0xff]   ;;  %s1603_s11 = sshll.u32 %s2692_s14, 1 }
  0x14   : > { %s348_s19 = sadd.s32 %s2335_s15, %s1599_s18  ;;  %1921 = vmatpush3.bf16.msra.mxu1 %v2124_v6  ;;  %1902 = vmatprep.subr.bf16.mxu0 %v2234_v1  ;;  %v2151_v39 = vld [vmem:[%s2673_s3 + $0xf8] sm:$0xff]   ;;  %v2154_v43 = vld [vmem:[%s2673_s3 + $0x140] sm:$0xff]   ;;  %v2155_v44 = vld [vmem:[%s2673_s3 + $0x108] sm:$0xff]   ;;  %s369_s16 = sadd.s32 %s2335_s15, %s1603_s11 }
  0x15   : > { %s1600_s29 = sshll.u32 %s348_s19, 2  ;;  %1922 = vmatprep.subr.bf16.mxu1 %v2234_v1  ;;  %s1601_s19 = sshll.u32 %s2690_s7, 1  ;;  %v2156_v45 = vld [vmem:[%s2673_s3 + $0x148] sm:$0xff]   ;;  %v2157_v46 = vld [vmem:[%s2673_s3 + $0x110] sm:$0xff]   ;;  %v2159_v48 = vld [vmem:[%s2673_s3 + $0x118] sm:$0xff]  }
  0x16   : > { %s350_s10 = scalar_lea.vmem %s2670_s0, %s1600_s29  ;;  %s358_s29 = sadd.s32 %s2335_s15, %s1601_s19  ;;  %v2158_v47 = vld [vmem:[%s2673_s3 + $0x150] sm:$0xff]   ;;  %v2160_v49 = vld [vmem:[%s2673_s3 + $0x158] sm:$0xff]   ;;  %v2161_v51 = vld [vmem:[%s2673_s3 + $0x120] sm:$0xff]  }
  0x17   : > { %1903 = vmatpush3.bf16.msra.mxu0 %v2125_v7  ;;  %v390_v11 = vld [vmem:[%s350_s10] sm:$0xf]  ;;  %v391_v12 = vld [vmem:[%s350_s10 + $0x4] sm:$0x1]  ;;  %s1602_s10 = sshll.u32 %s358_s29, 2  ;;  %v2163_v54 = vld [vmem:[%s2673_s3 + $0x128] sm:$0xff]  }
  0x18   : > { %1923 = vmatpush3.bf16.msra.mxu1 %v2126_v8  ;;  %1904 = vmatprep.subr.bf16.mxu0 %v2234_v1  ;;  %v2362_v13 = vcombine.low %v390_v11, %v391_v12  ;;  %s2462_s18 = scalar_lea.vmem %s2671_s1, %s1602_s10  ;;  %v2162_v52 = vld [vmem:[%s2673_s3 + $0x160] sm:$0xff]   ;;  %v2164_v55 = vld [vmem:[%s2673_s3 + $0x168] sm:$0xff]   ;;  %v2165_v57 = vld [vmem:[%s2673_s3 + $0x130] sm:$0xff]   ;;  %s1604_s14 = sshll.u32 %s369_s16, 2 }
  0x19   : > { %1924 = vmatprep.subr.bf16.mxu1 %v2234_v1  ;;  %v392_v42 = vld [vmem:[%s2462_s18] sm:$0xf]  ;;  %v393_v50 = vld [vmem:[%s2462_s18 + $0x4] sm:$0x1]  ;;  %v2166_v58 = vld [vmem:[%s2673_s3 + $0x170] sm:$0xff]   ;;  %s371_s9 = scalar_lea.vmem %s2672_s2, %s1604_s14  ;;  %s2694_s21 = smov (!%p375_p9, %s2216_s21), 7 }
  0x1a   : > { %v437_v16 = vshll.u32 %v2362_v13, 16  ;;  %v435_v19 = vshrl.u32 %v2362_v13, 16  ;;  %v635_v40 = vrot.slane %v2362_v13, 1  ;;  %v1706_v53 = vcombine.low %v392_v42, %v393_v50  ;;  %v2167_v61 = vld [vmem:[%s2673_s3 + $0x138] sm:$0xff]   ;;  %v2169_v0 = vld [vmem:[%s2673_s3 + $0x180] sm:$0xff]   ;;  %v2171_v4 = vld [vmem:[%s2673_s3 + $0x188] sm:$0xff]  }
  0x1b   : > { %1905 = vmatpush3.bf16.msra.mxu0 %v2127_v9  ;;  %v2168_v62 = vld [vmem:[%s2673_s3 + $0x178] sm:$0xff]   ;;  %v2170_v3 = vld [vmem:[%s2673_s3 + $0x1c0] sm:$0xff]   ;;  %v2172_v5 = vld [vmem:[%s2673_s3 + $0x1c8] sm:$0xff]   ;;  %s1605_s8 = sshll.u32 %s2688_s22, 3 }
  0x1c   : > { %1925 = vmatpush3.bf16.msra.mxu1 %v2128_v10  ;;  %1906 = vmatprep.subr.bf16.mxu0 %v2234_v1  ;;  %v439_v20 = vrot.slane %v437_v16, 1  ;;  %v857_v56 = vshll.u32 %v1706_v53, 16  ;;  %v855_v59 = vshrl.u32 %v1706_v53, 16  ;;  %v968_v2 = vrot.slane %v1706_v53, 1  ;;  %v2173_v6 = vld [vmem:[%s2673_s3 + $0x190] sm:$0xff]   ;;  %v2175_v8 = vld [vmem:[%s2673_s3 + $0x198] sm:$0xff]  }
  0x1d   : > { %1926 = vmatprep.subr.bf16.mxu1 %v2234_v1  ;;  %v2174_v7 = vld [vmem:[%s2673_s3 + $0x1d0] sm:$0xff]   ;;  %v2176_v9 = vld [vmem:[%s2673_s3 + $0x1d8] sm:$0xff]   ;;  %v2177_v10 = vld [vmem:[%s2673_s3 + $0x1a0] sm:$0xff]  }
  0x1e   : > { %v440_v23 = vor.u32 %v439_v20, %v435_v19  ;;  %v859_v60 = vrot.slane %v857_v56, 1  ;;  %v394_v12 = vld [vmem:[%s371_s9] sm:$0xf]  ;;  %v395_v13 = vld [vmem:[%s371_s9 + $0x4] sm:$0x1]  ;;  %v2180_v16 = vld [vmem:[%s2673_s3 + $0x1e8] sm:$0xff]   ;;  %s378_s9 = sadd.s32 %s1605_s8, %s2694_s21 }
  0x1f   : > { %1907 = vmatpush3.bf16.msra.mxu0 %v2129_v14  ;;  %v2179_v14 = vld [vmem:[%s2673_s3 + $0x1a8] sm:$0xff]   ;;  %v2182_v19 = vld [vmem:[%s2673_s3 + $0x1f0] sm:$0xff]   ;;  %v2183_v20 = vld [vmem:[%s2673_s3 + $0x1b8] sm:$0xff]   ;;  %s1606_s18 = sshll.u32 %s378_s9, 3  ;;  %s1608_s21 = sshll.u32 %s378_s9, 1 }
  0x20   : > { %1927 = vmatpush3.bf16.msra.mxu1 %v2130_v15  ;;  %1908 = vmatprep.subr.bf16.mxu0 %v2234_v1  ;;  %v860_v63 = vor.u32 %v859_v60, %v855_v59  ;;  %v1779_v15 = vcombine.low %v394_v12, %v395_v13  ;;  %s380_s13 = scalar_lea.vmem %s2675_s5, %s1606_s18  ;;  %s388_s17 = scalar_lea.vmem %s2676_s6, %s1608_s21 }
  0x21   : > { %1928 = vmatprep.subr.bf16.mxu1 %v2234_v1 }
  0x23   : > { %1909 = vmatpush3.bf16.msra.mxu0 %v2131_v17  ;;  %v2181_v17 = vld [vmem:[%s2673_s3 + $0x1b0] sm:$0xff]  }
  0x24   : > { %1929 = vmatpush3.bf16.msra.mxu1 %v2132_v18  ;;  %1910 = vmatprep.subr.bf16.mxu0 %v2234_v1  ;;  %v1190_v18 = vshll.u32 %v1779_v15, 16 }
  0x25   : > { %1930 = vmatprep.subr.bf16.mxu1 %v2234_v1 }
  0x27   : > { %1911 = vmatpush3.bf16.msra.mxu0 %v2133_v21  ;;  %v1188_v21 = vshrl.u32 %v1779_v15, 16 }
  0x28   : > { %1931 = vmatpush3.bf16.msra.mxu1 %v2134_v22  ;;  %1936 = vmatprep.subr.bf16.mxu0 %v2234_v1  ;;  %v1192_v22 = vrot.slane %v1190_v18, 1 }
  0x29   : > { %1956 = vmatprep.subr.bf16.mxu1 %v2234_v1 }
  0x2a   : > { %1913 = vmatmul.mubr.bf16.vlgmr.msra.gmra.mrb[0].mxu0 %v440_v23  ;;  %v2184_v23 = vld [vmem:[%s2673_s3 + $0x1f8] sm:$0xff]  }
  0x2b   : > { %1933 = vmatmul.mubr.bf16.vlgmr.msra.gmra.mrb[0].mxu1 %v390_v11  ;;  %1937 = vmatpush3.bf16.msra.mxu0 %v2136_v24  ;;  %v2178_v11 = vld [vmem:[%s2673_s3 + $0x1e0] sm:$0xff]  }
  0x2c   : > { %1957 = vmatpush3.bf16.msra.mxu1 %v2137_v25  ;;  %1938 = vmatprep.subr.bf16.mxu0 %v2234_v1  ;;  %v2186_v24 = vld [vmem:[%s2673_s3 + $0x200] sm:$0xff]   ;;  %v1193_v25 = vor.u32 %v1192_v22, %v1188_v21 }
  0x2d   : > { %1958 = vmatprep.subr.bf16.mxu1 %v2234_v1  ;;  %1952 = vmatprep.mubr.msk.bf16.mxu0 %vm2235_vm0, %v2234_v1 }
  0x2e   : > { %1972 = vmatprep.mubr.msk.bf16.mxu1 %vm2235_vm0, %v2234_v1 }
  0x2f   : > { %1939 = vmatpush3.bf16.msra.mxu0 %v2138_v26  ;;  %v2187_v26 = vld [vmem:[%s2673_s3 + $0x208] sm:$0xff]  }
  0x30   : > { %1959 = vmatpush3.bf16.msra.mxu1 %v2139_v27  ;;  %1940 = vmatprep.subr.bf16.mxu0 %v2234_v1  ;;  %v2188_v27 = vld [vmem:[%s2673_s3 + $0x210] sm:$0xff]  }
  0x31   : > { %1960 = vmatprep.subr.bf16.mxu1 %v2234_v1 }
  0x33   : > { %1941 = vmatpush3.bf16.msra.mxu0 %v2140_v28  ;;  %v2189_v28 = vld [vmem:[%s2673_s3 + $0x218] sm:$0xff]  }
  0x34   : > { %1961 = vmatpush3.bf16.msra.mxu1 %v2141_v29  ;;  %1942 = vmatprep.subr.bf16.mxu0 %v2234_v1  ;;  %v2190_v29 = vld [vmem:[%s2673_s3 + $0x220] sm:$0xff]  }
  0x35   : > { %1962 = vmatprep.subr.bf16.mxu1 %v2234_v1 }
  0x37   : > { %1943 = vmatpush3.bf16.msra.mxu0 %v2142_v30  ;;  %v2191_v30 = vld [vmem:[%s2673_s3 + $0x228] sm:$0xff]  }
  0x38   : > { %1963 = vmatpush3.bf16.msra.mxu1 %v2143_v31  ;;  %1944 = vmatprep.subr.bf16.mxu0 %v2234_v1  ;;  %v2192_v31 = vld [vmem:[%s2673_s3 + $0x230] sm:$0xff]  }
  0x39   : > { %1964 = vmatprep.subr.bf16.mxu1 %v2234_v1 }
  0x3b   : > { %1945 = vmatpush3.bf16.msra.mxu0 %v2144_v32  ;;  %v2193_v32 = vld [vmem:[%s2673_s3 + $0x238] sm:$0xff]  }
  0x3c   : > { %1965 = vmatpush3.bf16.msra.mxu1 %v2145_v33  ;;  %1946 = vmatprep.subr.bf16.mxu0 %v2234_v1  ;;  %v1301_v33 = vrot.slane %v1779_v15, 1 }
  0x3d   : > { %1966 = vmatprep.subr.bf16.mxu1 %v2234_v1 }
  0x3f   : > { %1947 = vmatpush3.bf16.msra.mxu0 %v2146_v34 }
  0x40   : > { %1967 = vmatpush3.bf16.msra.mxu1 %v2147_v35  ;;  %1948 = vmatprep.subr.bf16.mxu0 %v2234_v1 }
  0x41   : > { %1968 = vmatprep.subr.bf16.mxu1 %v2234_v1 }
  0x43   : > { %1949 = vmatpush3.bf16.msra.mxu0 %v2148_v36 }
  0x44   : > { %1969 = vmatpush3.bf16.msra.mxu1 %v2149_v37  ;;  %1950 = vmatprep.subr.bf16.mxu0 %v2234_v1 }
  0x45   : > { %1970 = vmatprep.subr.bf16.mxu1 %v2234_v1 }
  0x47   : > { %1951 = vmatpush3.bf16.msra.mxu0 %v2150_v38 }
  0x48   : > { %1971 = vmatpush3.bf16.msra.mxu1 %v2151_v39  ;;  %1976 = vmatprep.subr.bf16.mxu0 %v2234_v1 }
  0x49   : > { %1996 = vmatprep.subr.bf16.mxu1 %v2234_v1 }
  0x4a   : > { %1953 = vmatmul.mubr.bf16.vlgmr.msra.gmra.mrb[4].mxu0 %v635_v40 }
  0x4b   : > { %1977 = vmatpush3.bf16.msra.mxu0 %v2152_v41  ;;  %1973 = vmatmul.mubr.bf16.vlgmr.msra.gmra.mrb[4].mxu1 %v392_v42 }
  0x4c   : > { %1997 = vmatpush3.bf16.msra.mxu1 %v2154_v43  ;;  %1978 = vmatprep.subr.bf16.mxu0 %v2234_v1 }
  0x4d   : > { %1998 = vmatprep.subr.bf16.mxu1 %v2234_v1  ;;  %1992 = vmatprep.mubr.msk.bf16.mxu0 %vm2235_vm0, %v2234_v1 }
  0x4e   : > { %2012 = vmatprep.mubr.msk.bf16.mxu1 %vm2235_vm0, %v2234_v1 }
  0x4f   : > { %1979 = vmatpush3.bf16.msra.mxu0 %v2155_v44 }
  0x50   : > { %1999 = vmatpush3.bf16.msra.mxu1 %v2156_v45  ;;  %1980 = vmatprep.subr.bf16.mxu0 %v2234_v1 }
  0x51   : > { %2000 = vmatprep.subr.bf16.mxu1 %v2234_v1 }
  0x53   : > { %1981 = vmatpush3.bf16.msra.mxu0 %v2157_v46 }
  0x54   : > { %2001 = vmatpush3.bf16.msra.mxu1 %v2158_v47  ;;  %1982 = vmatprep.subr.bf16.mxu0 %v2234_v1 }
  0x55   : > { %2002 = vmatprep.subr.bf16.mxu1 %v2234_v1 }
  0x57   : > { %1983 = vmatpush3.bf16.msra.mxu0 %v2159_v48 }
  0x58   : > { %2003 = vmatpush3.bf16.msra.mxu1 %v2160_v49  ;;  %1984 = vmatprep.subr.bf16.mxu0 %v2234_v1 }
  0x59   : > { %2004 = vmatprep.subr.bf16.mxu1 %v2234_v1 }
  0x5b   : > { %1985 = vmatpush3.bf16.msra.mxu0 %v2161_v51 }
  0x5c   : > { %2005 = vmatpush3.bf16.msra.mxu1 %v2162_v52  ;;  %1986 = vmatprep.subr.bf16.mxu0 %v2234_v1 }
  0x5d   : > { %2006 = vmatprep.subr.bf16.mxu1 %v2234_v1 }
  0x5f   : > { %1987 = vmatpush3.bf16.msra.mxu0 %v2163_v54 }
  0x60   : > { %2007 = vmatpush3.bf16.msra.mxu1 %v2164_v55  ;;  %1988 = vmatprep.subr.bf16.mxu0 %v2234_v1 }
  0x61   : > { %2008 = vmatprep.subr.bf16.mxu1 %v2234_v1 }
  0x63   : > { %1989 = vmatpush3.bf16.msra.mxu0 %v2165_v57 }
  0x64   : > { %2009 = vmatpush3.bf16.msra.mxu1 %v2166_v58  ;;  %1990 = vmatprep.subr.bf16.mxu0 %v2234_v1 }
  0x65   : > { %2010 = vmatprep.subr.bf16.mxu1 %v2234_v1 }
  0x67   : > { %1991 = vmatpush3.bf16.msra.mxu0 %v2167_v61 }
  0x68   : > { %2011 = vmatpush3.bf16.msra.mxu1 %v2168_v62  ;;  %2016 = vmatprep.subr.bf16.mxu0 %v2234_v1 }
  0x69   : > { %2036 = vmatprep.subr.bf16.mxu1 %v2234_v1 }
  0x6a   : > { %1993 = vmatmul.mubr.bf16.vlgmr.msra.gmra.mrb[8].mxu0 %v860_v63 }
  0x6b   : > { %2017 = vmatpush3.bf16.msra.mxu0 %v2169_v0  ;;  %2013 = vmatmul.mubr.bf16.vlgmr.msra.gmra.mrb[8].mxu1 %v968_v2 }
  0x6c   : > { %2037 = vmatpush3.bf16.msra.mxu1 %v2170_v3  ;;  %2018 = vmatprep.subr.bf16.mxu0 %v2234_v1 }
  0x6d   : > { %2038 = vmatprep.subr.bf16.mxu1 %v2234_v1  ;;  %2032 = vmatprep.mubr.msk.bf16.mxu0 %vm2235_vm0, %v2234_v1 }
  0x6e   : > { %2052 = vmatprep.mubr.msk.bf16.mxu1 %vm2235_vm0, %v2234_v1 }
  0x6f   : > { %2019 = vmatpush3.bf16.msra.mxu0 %v2171_v4 }
  0x70   : > { %2039 = vmatpush3.bf16.msra.mxu1 %v2172_v5  ;;  %2020 = vmatprep.subr.bf16.mxu0 %v2234_v1 }
  0x71   : > { %2040 = vmatprep.subr.bf16.mxu1 %v2234_v1 }
  0x73   : > { %2021 = vmatpush3.bf16.msra.mxu0 %v2173_v6 }
  0x74   : > { %2041 = vmatpush3.bf16.msra.mxu1 %v2174_v7  ;;  %2022 = vmatprep.subr.bf16.mxu0 %v2234_v1 }
  0x75   : > { %2042 = vmatprep.subr.bf16.mxu1 %v2234_v1 }
  0x77   : > { %2023 = vmatpush3.bf16.msra.mxu0 %v2175_v8 }
  0x78   : > { %2043 = vmatpush3.bf16.msra.mxu1 %v2176_v9  ;;  %2024 = vmatprep.subr.bf16.mxu0 %v2234_v1 }
  0x79   : > { %2044 = vmatprep.subr.bf16.mxu1 %v2234_v1 }
  0x7b   : > { %2025 = vmatpush3.bf16.msra.mxu0 %v2177_v10  ;;  %v1812_v10 = vld [vmem:[%s2674_s4] ss:$0 sm:$0xff] }
  0x7c   : > { %2045 = vmatpush3.bf16.msra.mxu1 %v2178_v11  ;;  %2026 = vmatprep.subr.bf16.mxu0 %v2234_v1 }
  0x7d   : > { %2046 = vmatprep.subr.bf16.mxu1 %v2234_v1 }
  0x7f   : > { %2027 = vmatpush3.bf16.msra.mxu0 %v2179_v14 }
  0x80   : > { %2047 = vmatpush3.bf16.msra.mxu1 %v2180_v16  ;;  %2028 = vmatprep.subr.bf16.mxu0 %v2234_v1 }
  0x81   : > { %2048 = vmatprep.subr.bf16.mxu1 %v2234_v1 }
  0x83   : > { %2029 = vmatpush3.bf16.msra.mxu0 %v2181_v17 }
  0x84   : > { %2049 = vmatpush3.bf16.msra.mxu1 %v2182_v19  ;;  %2030 = vmatprep.subr.bf16.mxu0 %v2234_v1 }
  0x85   : > { %2050 = vmatprep.subr.bf16.mxu1 %v2234_v1 }
  0x87   : > { %2031 = vmatpush3.bf16.msra.mxu0 %v2183_v20 }
  0x88   : > { %2051 = vmatpush3.bf16.msra.mxu1 %v2184_v23  ;;  %2056 = vmatprep.subr.bf16.mxu0 %v2234_v1 }
  0x8a   : > { %2033 = vmatmul.mubr.bf16.vlgmr.msra.gmra.mrb[12].mxu0 %v394_v12 }
  0x8b   : > { %2057 = vmatpush3.bf16.msra.mxu0 %v2186_v24  ;;  %2053 = vmatmul.mubr.bf16.vlgmr.msra.gmra.mrb[12].mxu1 %v1193_v25 }
  0x8c   : > { %2058 = vmatprep.subr.bf16.mxu0 %v2234_v1  ;;  %2072 = vmatprep.mubr.msk.bf16.mxu0 %vm2235_vm0, %v2234_v1 }
  0x8f   : > { %2059 = vmatpush3.bf16.msra.mxu0 %v2187_v26 }
  0x90   : > { %2060 = vmatprep.subr.bf16.mxu0 %v2234_v1 }
  0x93   : > { %2061 = vmatpush3.bf16.msra.mxu0 %v2188_v27 }
  0x94   : > { %2062 = vmatprep.subr.bf16.mxu0 %v2234_v1 }
  0x97   : > { %2063 = vmatpush3.bf16.msra.mxu0 %v2189_v28 }
  0x98   : > { %2064 = vmatprep.subr.bf16.mxu0 %v2234_v1 }
  0x9b   : > { %2065 = vmatpush3.bf16.msra.mxu0 %v2190_v29 }
  0x9c   : > { %2066 = vmatprep.subr.bf16.mxu0 %v2234_v1 }
  0x9f   : > { %2067 = vmatpush3.bf16.msra.mxu0 %v2191_v30 }
  0xa0   : > { %2068 = vmatprep.subr.bf16.mxu0 %v2234_v1 }
  0xa3   : > { %2069 = vmatpush3.bf16.msra.mxu0 %v2192_v31 }
  0xa4   : > { %2070 = vmatprep.subr.bf16.mxu0 %v2234_v1 }
  0xa7   : > { %2071 = vmatpush3.bf16.msra.mxu0 %v2193_v32 }
  0xaa   : > { %2073 = vmatmul.mubr.bf16.vlgmr.msra.gmra.mrb[16].mxu0 %v1301_v33 }
  0xfd   : > { %v524_v34 = vpop.f32.mrb[0].mxu0 }
  0xfe   : > { %v1914_v35 = vpop.f32.mrb[1].mxu0  ;;  %v612_v36 = vpop.f32.mrb[0].mxu1 }
  0xff   : > { %v613_v37 = vadd.f32 %v612_v36, %v524_v34  ;;  %v527_v38 = vpop.f32.mrb[2].mxu0  ;;  %v1934_v39 = vpop.f32.mrb[1].mxu1 }
 0x100   : > { %v1915_v40 = vpop.f32.mrb[3].mxu0  ;;  %v615_v41 = vpop.f32.mrb[2].mxu1 }
 0x101   : > { %v1935_v42 = vpop.f32.mrb[3].mxu1 }
 0x11d   : > { %v719_v43 = vpop.f32.mrb[4].mxu0 }
 0x11e   : > { %v725_v44 = vadd.f32 %v719_v43, %v613_v37  ;;  %v1954_v45 = vpop.f32.mrb[5].mxu0  ;;  %v825_v46 = vpop.f32.mrb[4].mxu1 }
 0x11f   : > { %v722_v47 = vpop.f32.mrb[6].mxu0  ;;  %v1974_v48 = vpop.f32.mrb[5].mxu1 }
 0x120   : > { %v831_v49 = vadd.f32 %v825_v46, %v725_v44  ;;  %v1955_v1 = vpop.f32.mrb[7].mxu0  ;;  %v828_v50 = vpop.f32.mrb[6].mxu1 }
 0x121   : > { %v1975_v51 = vpop.f32.mrb[7].mxu1 }
 0x13d   : > { %v944_v52 = vpop.f32.mrb[8].mxu0 }
 0x13e   : > { %v950_v53 = vadd.f32 %v944_v52, %v831_v49  ;;  %v1994_v54 = vpop.f32.mrb[9].mxu0  ;;  %v1052_v55 = vpop.f32.mrb[8].mxu1 }
 0x13f   : > { %v947_v56 = vpop.f32.mrb[10].mxu0  ;;  %v2014_v57 = vpop.f32.mrb[9].mxu1 }
 0x140   : > { %v1058_v58 = vadd.f32 %v1052_v55, %v950_v53  ;;  %v1995_v59 = vpop.f32.mrb[11].mxu0  ;;  %v1055_v60 = vpop.f32.mrb[10].mxu1 }
 0x141   : > { %v2015_v61 = vpop.f32.mrb[11].mxu1 }
 0x15d   : > { %v1158_v62 = vpop.f32.mrb[12].mxu0 }
 0x15e   : > { %v1164_v63 = vadd.f32 %v1158_v62, %v1058_v58  ;;  %v2034_v0 = vpop.f32.mrb[13].mxu0  ;;  %v1277_v2 = vpop.f32.mrb[12].mxu1 }
 0x15f   : > { %v1161_v3 = vpop.f32.mrb[14].mxu0  ;;  %v2054_v4 = vpop.f32.mrb[13].mxu1 }
 0x160   : > { %v1283_v5 = vadd.f32 %v1277_v2, %v1164_v63  ;;  %v2035_v6 = vpop.f32.mrb[15].mxu0  ;;  %v1280_v7 = vpop.f32.mrb[14].mxu1 }
 0x161   : > { %v2055_v8 = vpop.f32.mrb[15].mxu1 }
 0x17d   : > { %v1385_v9 = vpop.f32.mrb[16].mxu0 }
 0x17e   : > { %v1391_v11 = vadd.f32 %v1385_v9, %v1283_v5  ;;  %v2074_v12 = vpop.f32.mrb[17].mxu0 }
 0x17f   : > { %v1388_v13 = vpop.f32.mrb[18].mxu0 }
 0x180   : > { %v1399_v14 = vadd.f32 %v1812_v10, %v1391_v11  ;;  %v2075_v15 = vpop.f32.mrb[19].mxu0 }
 0x182   : > { %1400 = vst [vmem:[%s380_s13] sm:$0xff] %v1399_v14  ;;  %v1401_v16 = vrot.slane %v1399_v14, 4  ;;  %v1408_v17 = vmul.f32 %v1399_v14, %v1399_v14 }
 0x184   : > { %v1402_v18 = vadd.f32 %v1401_v16, %v1399_v14  ;;  %v1409_v19 = vrot.slane %v1408_v17, 4 }
 0x186   : > { %v1403_v20 = vrot.slane %v1402_v18, 2  ;;  %v1410_v21 = vadd.f32 %v1409_v19, %v1408_v17 }
 0x188   : > { %v1404_v22 = vadd.f32 %v1403_v20, %v1402_v18  ;;  %v1411_v23 = vrot.slane %v1410_v21, 2 }
 0x18a   : > { %v1405_v24 = vrot.slane %v1404_v22, 1  ;;  %v1412_v25 = vadd.f32 %v1411_v23, %v1410_v21 }
 0x18c   : > { %v1406_v26 = vadd.f32 %v1405_v24, %v1404_v22  ;;  %v1413_v27 = vrot.slane %v1412_v25, 1 }
 0x18e   : > { %1407 = vst [vmem:[%s388_s17] sm:$0x1] %v1406_v26  ;;  %v1414_v28 = vadd.f32 %v1413_v27, %v1412_v25 }
 0x190   : > { %1415 = vst [vmem:[%s388_s17 + $0x1] sm:$0x1] %v1414_v28 }
 0x191 PF: > { %s17_s25 = sadd.s32 1, %s2232_s25   ;;  %s2677_s21 = smov %s2224_s23 }
 0x192   : > { %p14_p10 = scmp.ge.s32.totalorder %s17_s25, 18   ;;  %s2678_s22 = smov %s2228_s24 }
 0x193   : > { %s2679_s23 = smov %s2682_s26  ;;  %s2680_s24 = smov %s2686_s27 }
 0x194   :  { %16 = sbr.rel (!%p14_p10) target bundleno = 3 (0x3), region = 96 }

</bundles_post_ra>
